<compile_context>
chip_gen: v7x
topology: tpu7x:2x2x1
jax: 0.10.0
libtpu: 0.0.40
codegen_flags: <defaults>
</compile_context>

<pallas_src>
import jax
import jax.numpy as jnp
import numpy as np
from jax.experimental import pallas as pl
from jax.experimental.pallas import tpu as pltpu

# ---- config (matches the PyTorch module defaults) ----
PREDICTED_STEPS = 6          # module uses predicted_steps * 2 internally
K = 3                        # num_predictions
LOSS_FUN = "MSE"             # -> output_size = predicted_steps*2*K (no GNLLL doubling)
HIDDEN = 128                 # hidden_unit (module default)
NUM_LAYERS = 3               # num_lstm_layer
ENC_HIDDEN = 128
DEC_HIDDEN = 128
IN_FEATURES = 4
OUTPUT_SIZE = PREDICTED_STEPS * 2 * K   # 36
OUT_PAD = 128                # lane-dense padded decoder output width


# ---------------- fused encoder -> LSTM -> decoder kernel ----------------
# TODO(synk): MLPEncoder/MLPDecoder source was not provided; implemented as
# Linear -> ReLU -> Linear applied over the last (feature) dimension.
#
# Weights are pre-transposed: wih/whh are (L, H, 4H), bias is (L, 1, 4H)
# (b_ih + b_hh combined).  Gate column order is [i, f, o, g] (PyTorch uses
# [i, f, g, o]; a real checkpoint would be permuted host-side on load).
# Input x_ref is (T*N, F), row t*N + n <-> (timestep t, sequence n).
def fused_lstm_kernel(x_ref, ew1_ref, eb1_ref, ew2_ref, eb2_ref,
                      wih_ref, whh_ref, b_ref,
                      dw1_ref, db1_ref, dw2_ref, db2_ref,
                      out_ref, seq_ref, gx_ref):
    layer = pl.program_id(0)
    n_layers = pl.num_programs(0)
    H = HIDDEN
    N = out_ref.shape[0]
    TN = seq_ref.shape[0]
    T = TN // N

    def bdot(a, w):
        # bf16 MXU operands, f32 accumulation.
        return jnp.dot(a.astype(jnp.bfloat16), w, preferred_element_type=jnp.float32)

    # ----- encoder MLP (grid step 0 only; time-parallel over features) -----
    @pl.when(layer == 0)
    def _encode():
        x = x_ref[...]                                   # (TN, F) f32
        acc = eb1_ref[...]                               # (1, ENC_HIDDEN), broadcasts
        for k in range(IN_FEATURES):                     # 4 VPU broadcast-fma's
            acc = acc + x[:, k:k + 1] * ew1_ref[k:k + 1, :]
        e1 = jnp.maximum(acc, 0.0)                       # (TN, ENC_HIDDEN) f32
        seq_ref[...] = (bdot(e1, ew2_ref[...]) + eb2_ref[...]).astype(seq_ref.dtype)

    # ----- one LSTM layer per grid step -----
    wih = wih_ref[...]       # (H, 4H) bf16, double-buffered per layer
    whh = whh_ref[...]       # (H, 4H) bf16
    bias = b_ref[...]        # (1, 4H) f32

    # hoisted time-parallel input projection for the whole sequence
    gx_ref[...] = jnp.dot(seq_ref[...], wih,
                          preferred_element_type=jnp.float32) + bias   # (TN, 4H)

    h = jnp.zeros((N, H), jnp.float32)
    c = jnp.zeros((N, H), jnp.float32)
    for t in range(T):                                   # static T -> fully unrolled
        gates = gx_ref[pl.ds(t * N, N), :] + bdot(h, whh)        # (N, 4H) f32
        # sigmoid(x) = 0.5*tanh(0.5*x)+0.5 over the contiguous [i|f|o] slab
        sfo = jnp.tanh(gates[:, :3 * H] * 0.5) * 0.5 + 0.5
        g_g = jnp.tanh(gates[:, 3 * H:])
        i_g = sfo[:, 0 * H:1 * H]
        f_g = sfo[:, 1 * H:2 * H]
        o_g = sfo[:, 2 * H:3 * H]
        c = f_g * c + i_g * g_g
        h = o_g * jnp.tanh(c)
        # safe overwrite: this layer's input is already snapshotted in gx_ref
        seq_ref[pl.ds(t * N, N), :] = h.astype(seq_ref.dtype)

    # ----- decoder MLP on hidden_state[-1] (last grid step only) -----
    @pl.when(layer == n_layers - 1)
    def _decode():
        d1 = jnp.maximum(bdot(h, dw1_ref[...]) + db1_ref[...], 0.0)
        out_ref[...] = bdot(d1, dw2_ref[...]) + db2_ref[...]     # (N, OUT_PAD)


def fused_forward(x2d, params, n_pad, t):
    tn = t * n_pad
    full = lambda l: (0, 0)          # resident across all grid steps (DMA'd once)
    per_layer = lambda l: (l, 0, 0)  # double-buffered per-layer weights

    grid_spec = pltpu.PrefetchScalarGridSpec(
        num_scalar_prefetch=0,
        grid=(NUM_LAYERS,),
        in_specs=[
            pl.BlockSpec((tn, IN_FEATURES), full),                 # x
            pl.BlockSpec((IN_FEATURES, ENC_HIDDEN), full),         # enc_w1
            pl.BlockSpec((1, ENC_HIDDEN), full),                   # enc_b1
            pl.BlockSpec((ENC_HIDDEN, HIDDEN), full),              # enc_w2
            pl.BlockSpec((1, HIDDEN), full),                       # enc_b2
            pl.BlockSpec((None, HIDDEN, 4 * HIDDEN), per_layer),   # wih
            pl.BlockSpec((None, HIDDEN, 4 * HIDDEN), per_layer),   # whh
            pl.BlockSpec((None, 1, 4 * HIDDEN), per_layer),        # b
            pl.BlockSpec((HIDDEN, DEC_HIDDEN), full),              # dec_w1
            pl.BlockSpec((1, DEC_HIDDEN), full),                   # dec_b1
            pl.BlockSpec((DEC_HIDDEN, OUT_PAD), full),             # dec_w2
            pl.BlockSpec((1, OUT_PAD), full),                      # dec_b2
        ],
        out_specs=pl.BlockSpec((n_pad, OUT_PAD), full),
        scratch_shapes=[
            pltpu.VMEM((tn, HIDDEN), jnp.bfloat16),       # layer-output sequence (bf16)
            pltpu.VMEM((tn, 4 * HIDDEN), jnp.float32),    # hoisted gate pre-activations
        ],
    )
    return pl.pallas_call(
        fused_lstm_kernel,
        out_shape=jax.ShapeDtypeStruct((n_pad, OUT_PAD), jnp.float32),
        grid_spec=grid_spec,
        compiler_params=pltpu.CompilerParams(
            dimension_semantics=("arbitrary",)),
    )(x2d,
      params["enc_w1"], params["enc_b1"], params["enc_w2"], params["enc_b2"],
      params["wih"], params["whh"], params["b"],
      params["dec_w1"], params["dec_b1"], params["dec_w2"], params["dec_b2"])


# ---------------- parameter init (deterministic, synthetic) ----------------
def init_params(key):
    ks = jax.random.split(key, 11)

    def u(k, shape, fan_in, dtype=jnp.float32):
        bound = 1.0 / np.sqrt(fan_in)
        return jax.random.uniform(k, shape, jnp.float32, -bound, bound).astype(dtype)

    bf = jnp.bfloat16  # matmul operands in bf16; biases stay f32

    # Decoder output padded to 128 lanes; unused columns are ZERO (no garbage).
    dw2 = jnp.zeros((DEC_HIDDEN, OUT_PAD), jnp.float32)
    dw2 = dw2.at[:, :OUTPUT_SIZE].set(u(ks[9], (DEC_HIDDEN, OUTPUT_SIZE), DEC_HIDDEN))
    db2 = jnp.zeros((1, OUT_PAD), jnp.float32)
    db2 = db2.at[:, :OUTPUT_SIZE].set(u(ks[10], (1, OUTPUT_SIZE), DEC_HIDDEN))

    return {
        # encoder first layer runs on the VPU (broadcast-fma) -> keep f32
        "enc_w1": u(ks[0], (IN_FEATURES, ENC_HIDDEN), IN_FEATURES),
        "enc_b1": u(ks[1], (1, ENC_HIDDEN), IN_FEATURES),
        "enc_w2": u(ks[2], (ENC_HIDDEN, HIDDEN), ENC_HIDDEN, bf),
        "enc_b2": u(ks[3], (1, HIDDEN), ENC_HIDDEN),
        # Gate column order: [i, f, o, g] (merged-sigmoid layout).
        "wih": u(ks[4], (NUM_LAYERS, HIDDEN, 4 * HIDDEN), HIDDEN, bf),
        "whh": u(ks[5], (NUM_LAYERS, HIDDEN, 4 * HIDDEN), HIDDEN, bf),
        "b": u(ks[6], (NUM_LAYERS, 1, 4 * HIDDEN), HIDDEN),
        "dec_w1": u(ks[7], (HIDDEN, DEC_HIDDEN), HIDDEN, bf),
        "dec_b1": u(ks[8], (1, DEC_HIDDEN), HIDDEN),
        "dec_w2": dw2.astype(bf),
        "dec_b2": db2,
    }


# ---------------- forward (mirrors LSTM.forward) ----------------
@jax.jit
def lstm_model_forward(x, params):
    B, A, T, F = x.shape
    # Only agent 0 reaches the decoder (hidden_state[-1].reshape(B,A,H)[:,0]);
    # sequences are independent, so skip agents 1..A-1 entirely.
    x0 = x[:, 0]                                   # (B, T, F)
    n_pad = -(-B // 8) * 8                         # pad batch to full sublane tiles
    xt = jnp.transpose(x0, (1, 0, 2))              # time-major: (T, B, F)
    xt = jnp.pad(xt, ((0, 0), (0, n_pad - B), (0, 0)))
    x2d = xt.reshape(T * n_pad, F)                 # row t*n_pad + n  <->  (t, n)
    out = fused_forward(x2d, params, n_pad, T)     # (n_pad, OUT_PAD)
    out = out[:B, :OUTPUT_SIZE]                    # padded rows/cols sliced away
    return out.reshape(B, K, -1)                   # (B, K, predicted_steps*2)


# ---------------- pure-JAX reference (full module path, all agents) ----------------
def reference_forward(x, params):
    B, A, T, F = x.shape
    H = HIDDEN

    def bdot(a, w):
        return jnp.dot(a.astype(jnp.bfloat16), w, preferred_element_type=jnp.float32)

    # encoder (first layer f32, second layer bf16 MXU — matches the kernel)
    e1 = jnp.maximum(jnp.dot(x.reshape(B * A * T, F), params["enc_w1"])
                     + params["enc_b1"], 0.0)
    enc = bdot(e1, params["enc_w2"]) + params["enc_b2"]
    inp = enc.reshape(B * A, T, H)

    h = jnp.zeros((B * A, H), jnp.float32)
    for l in range(NUM_LAYERS):
        wih, whh, b = params["wih"][l], params["whh"][l], params["b"][l]
        h = jnp.zeros((B * A, H), jnp.float32)
        c = jnp.zeros_like(h)
        outs = []
        for t in range(T):
            gates = bdot(inp[:, t], wih) + bdot(h, whh) + b
            i = jax.nn.sigmoid(gates[:, 0 * H:1 * H])
            f = jax.nn.sigmoid(gates[:, 1 * H:2 * H])
            o = jax.nn.sigmoid(gates[:, 2 * H:3 * H])
            g = jnp.tanh(gates[:, 3 * H:4 * H])
            c = f * c + i * g
            h = o * jnp.tanh(c)
            outs.append(h)
        inp = jnp.stack(outs, axis=1)
    h0 = h.reshape(B, A, H)[:, 0]
    d1 = jnp.maximum(bdot(h0, params["dec_w1"]) + params["dec_b1"], 0.0)
    out = (bdot(d1, params["dec_w2"]) + params["dec_b2"])[:, :OUTPUT_SIZE]
    return out.reshape(B, K, -1)


if __name__ == "__main__":
    key = jax.random.PRNGKey(0)
    pkey, xkey = jax.random.split(key)
    params = init_params(pkey)

    B, A, T = 2, 3, 8
    x = jax.random.normal(xkey, (B, A, T, IN_FEATURES), jnp.float32)

    out = lstm_model_forward(x, params)
    out = jax.block_until_ready(out)

    assert out.shape == (B, K, PREDICTED_STEPS * 2), out.shape
    ref = reference_forward(x, params)
    np.testing.assert_allclose(np.asarray(out), np.asarray(ref), atol=2e-2, rtol=2e-2)

    print("KERNEL_OK")
</pallas_src>

<mosaic_0001>
module attributes {stable_mosaic.version = 11 : i64} {
  func.func @fused_lstm_kernel(%arg0: i32, %arg1: memref<64x4xf32, #tpu.memory_space<vmem>>, %arg2: memref<4x128xf32, #tpu.memory_space<vmem>>, %arg3: memref<1x128xf32, #tpu.memory_space<vmem>>, %arg4: memref<128x128xbf16, #tpu.memory_space<vmem>>, %arg5: memref<1x128xf32, #tpu.memory_space<vmem>>, %arg6: memref<1x128x512xbf16, #tpu.memory_space<vmem>>, %arg7: memref<1x128x512xbf16, #tpu.memory_space<vmem>>, %arg8: memref<1x1x512xf32, #tpu.memory_space<vmem>>, %arg9: memref<128x128xbf16, #tpu.memory_space<vmem>>, %arg10: memref<1x128xf32, #tpu.memory_space<vmem>>, %arg11: memref<128x128xbf16, #tpu.memory_space<vmem>>, %arg12: memref<1x128xf32, #tpu.memory_space<vmem>>, %arg13: memref<8x128xf32, #tpu.memory_space<vmem>>, %arg14: memref<64x128xbf16, #tpu.memory_space<vmem>>, %arg15: memref<64x512xf32, #tpu.memory_space<vmem>>) attributes {dimension_semantics = [#tpu.dimension_semantics<arbitrary>], iteration_bounds = array<i64: 3>, scalar_prefetch = 0 : i64, scratch_operands = 2 : i64, tpu.core_type = #tpu.core_type<tc>, window_params = [{pipeline_mode = #tpu.pipeline_mode<synchronous>, transform_indices = @transform_0, window_bounds = array<i64: 64, 4>}, {pipeline_mode = #tpu.pipeline_mode<synchronous>, transform_indices = @transform_1, window_bounds = array<i64: 4, 128>}, {pipeline_mode = #tpu.pipeline_mode<synchronous>, transform_indices = @transform_2, window_bounds = array<i64: 1, 128>}, {pipeline_mode = #tpu.pipeline_mode<synchronous>, transform_indices = @transform_3, window_bounds = array<i64: 128, 128>}, {pipeline_mode = #tpu.pipeline_mode<synchronous>, transform_indices = @transform_4, window_bounds = array<i64: 1, 128>}, {transform_indices = @transform_5, window_bounds = array<i64: 1, 128, 512>}, {transform_indices = @transform_6, window_bounds = array<i64: 1, 128, 512>}, {transform_indices = @transform_7, window_bounds = array<i64: 1, 1, 512>}, {pipeline_mode = #tpu.pipeline_mode<synchronous>, transform_indices = @transform_8, window_bounds = array<i64: 128, 128>}, {pipeline_mode = #tpu.pipeline_mode<synchronous>, transform_indices = @transform_9, window_bounds = array<i64: 1, 128>}, {pipeline_mode = #tpu.pipeline_mode<synchronous>, transform_indices = @transform_10, window_bounds = array<i64: 128, 128>}, {pipeline_mode = #tpu.pipeline_mode<synchronous>, transform_indices = @transform_11, window_bounds = array<i64: 1, 128>}, {pipeline_mode = #tpu.pipeline_mode<synchronous>, transform_indices = @transform_12, window_bounds = array<i64: 8, 128>}]} {
    %c0_i32 = arith.constant 0 : i32
    %0 = arith.cmpi eq, %arg0, %c0_i32 : i32
    %1 = arith.extui %0 : i1 to i32
    %c0_i32_0 = arith.constant 0 : i32
    %2 = arith.cmpi ne, %1, %c0_i32_0 : i32
    scf.if %2 {
      %c0_73 = arith.constant 0 : index
      %c0_74 = arith.constant 0 : index
      %211 = vector.load %arg1[%c0_73, %c0_74] : memref<64x4xf32, #tpu.memory_space<vmem>>, vector<64x4xf32>
      %c0_75 = arith.constant 0 : index
      %c0_76 = arith.constant 0 : index
      %212 = vector.load %arg3[%c0_75, %c0_76] : memref<1x128xf32, #tpu.memory_space<vmem>>, vector<1x128xf32>
      %213 = vector.extract_strided_slice %211 {offsets = [0, 0], sizes = [64, 1], strides = [1, 1]} : vector<64x4xf32> to vector<64x1xf32>
      %c0_77 = arith.constant 0 : index
      %c0_78 = arith.constant 0 : index
      %214 = vector.load %arg2[%c0_77, %c0_78] : memref<4x128xf32, #tpu.memory_space<vmem>>, vector<1x128xf32>
      %215 = vector.broadcast %213 : vector<64x1xf32> to vector<64x128xf32>
      %216 = vector.broadcast %214 : vector<1x128xf32> to vector<64x128xf32>
      %217 = arith.mulf %215, %216 : vector<64x128xf32>
      %218 = vector.broadcast %212 : vector<1x128xf32> to vector<64x128xf32>
      %219 = arith.addf %218, %217 : vector<64x128xf32>
      %220 = vector.extract_strided_slice %211 {offsets = [0, 1], sizes = [64, 1], strides = [1, 1]} : vector<64x4xf32> to vector<64x1xf32>
      %c1 = arith.constant 1 : index
      %c0_79 = arith.constant 0 : index
      %221 = vector.load %arg2[%c1, %c0_79] : memref<4x128xf32, #tpu.memory_space<vmem>>, vector<1x128xf32>
      %222 = vector.broadcast %220 : vector<64x1xf32> to vector<64x128xf32>
      %223 = vector.broadcast %221 : vector<1x128xf32> to vector<64x128xf32>
      %224 = arith.mulf %222, %223 : vector<64x128xf32>
      %225 = arith.addf %219, %224 : vector<64x128xf32>
      %226 = vector.extract_strided_slice %211 {offsets = [0, 2], sizes = [64, 1], strides = [1, 1]} : vector<64x4xf32> to vector<64x1xf32>
      %c2 = arith.constant 2 : index
      %c0_80 = arith.constant 0 : index
      %227 = vector.load %arg2[%c2, %c0_80] : memref<4x128xf32, #tpu.memory_space<vmem>>, vector<1x128xf32>
      %228 = vector.broadcast %226 : vector<64x1xf32> to vector<64x128xf32>
      %229 = vector.broadcast %227 : vector<1x128xf32> to vector<64x128xf32>
      %230 = arith.mulf %228, %229 : vector<64x128xf32>
      %231 = arith.addf %225, %230 : vector<64x128xf32>
      %232 = vector.extract_strided_slice %211 {offsets = [0, 3], sizes = [64, 1], strides = [1, 1]} : vector<64x4xf32> to vector<64x1xf32>
      %c3 = arith.constant 3 : index
      %c0_81 = arith.constant 0 : index
      %233 = vector.load %arg2[%c3, %c0_81] : memref<4x128xf32, #tpu.memory_space<vmem>>, vector<1x128xf32>
      %234 = vector.broadcast %232 : vector<64x1xf32> to vector<64x128xf32>
      %235 = vector.broadcast %233 : vector<1x128xf32> to vector<64x128xf32>
      %236 = arith.mulf %234, %235 : vector<64x128xf32>
      %237 = arith.addf %231, %236 : vector<64x128xf32>
      %cst_82 = arith.constant 0.000000e+00 : f32
      %238 = vector.broadcast %cst_82 : f32 to vector<64x128xf32>
      %239 = arith.maximumf %237, %238 : vector<64x128xf32>
      %c0_83 = arith.constant 0 : index
      %c0_84 = arith.constant 0 : index
      %240 = vector.load %arg4[%c0_83, %c0_84] : memref<128x128xbf16, #tpu.memory_space<vmem>>, vector<128x128xbf16>
      %241 = arith.truncf %239 : vector<64x128xf32> to vector<64x128xbf16>
      %cst_85 = arith.constant dense<0.000000e+00> : vector<64x128xf32>
      %242 = tpu.matmul %241, %240, %cst_85 {dimension_numbers = #tpu.dot_dimension_numbers<[1], [0], [0], [1], [0, 0, 1, 1], [], []>} : vector<64x128xbf16>, vector<128x128xbf16>, vector<64x128xf32> -> vector<64x128xf32>
      %c0_86 = arith.constant 0 : index
      %c0_87 = arith.constant 0 : index
      %243 = vector.load %arg5[%c0_86, %c0_87] : memref<1x128xf32, #tpu.memory_space<vmem>>, vector<1x128xf32>
      %244 = vector.broadcast %243 : vector<1x128xf32> to vector<64x128xf32>
      %245 = arith.addf %242, %244 : vector<64x128xf32>
      %246 = arith.truncf %245 : vector<64x128xf32> to vector<64x128xbf16>
      %c0_88 = arith.constant 0 : index
      %c0_89 = arith.constant 0 : index
      %247 = vector.load %arg14[%c0_88, %c0_89] : memref<64x128xbf16, #tpu.memory_space<vmem>>, vector<64x128xbf16>
      tpu.vector_store %arg14[%c0_88, %c0_89], %246 {strides = array<i32>} : memref<64x128xbf16, #tpu.memory_space<vmem>>, vector<64x128xbf16>,
    } else {
    }
    %c0 = arith.constant 0 : index
    %c0_1 = arith.constant 0 : index
    %c0_2 = arith.constant 0 : index
    %3 = vector.load %arg6[%c0, %c0_1, %c0_2] : memref<1x128x512xbf16, #tpu.memory_space<vmem>>, vector<1x128x512xbf16>
    %4 = vector.shape_cast %3 : vector<1x128x512xbf16> to vector<128x512xbf16>
    %c0_3 = arith.constant 0 : index
    %c0_4 = arith.constant 0 : index
    %c0_5 = arith.constant 0 : index
    %5 = vector.load %arg7[%c0_3, %c0_4, %c0_5] : memref<1x128x512xbf16, #tpu.memory_space<vmem>>, vector<1x128x512xbf16>
    %6 = vector.shape_cast %5 : vector<1x128x512xbf16> to vector<128x512xbf16>
    %c0_6 = arith.constant 0 : index
    %c0_7 = arith.constant 0 : index
    %c0_8 = arith.constant 0 : index
    %7 = vector.load %arg8[%c0_6, %c0_7, %c0_8] : memref<1x1x512xf32, #tpu.memory_space<vmem>>, vector<1x1x512xf32>
    %8 = vector.shape_cast %7 : vector<1x1x512xf32> to vector<1x512xf32>
    %c0_9 = arith.constant 0 : index
    %c0_10 = arith.constant 0 : index
    %9 = vector.load %arg14[%c0_9, %c0_10] : memref<64x128xbf16, #tpu.memory_space<vmem>>, vector<64x128xbf16>
    %cst = arith.constant dense<0.000000e+00> : vector<64x512xf32>
    %10 = tpu.matmul %9, %4, %cst {dimension_numbers = #tpu.dot_dimension_numbers<[1], [0], [0], [1], [0, 0, 1, 1], [], []>} : vector<64x128xbf16>, vector<128x512xbf16>, vector<64x512xf32> -> vector<64x512xf32>
    %11 = vector.broadcast %8 : vector<1x512xf32> to vector<64x512xf32>
    %12 = arith.addf %10, %11 : vector<64x512xf32>
    %c0_11 = arith.constant 0 : index
    %c0_12 = arith.constant 0 : index
    %13 = vector.load %arg15[%c0_11, %c0_12] : memref<64x512xf32, #tpu.memory_space<vmem>>, vector<64x512xf32>
    tpu.vector_store %arg15[%c0_11, %c0_12], %12 {strides = array<i32>} : memref<64x512xf32, #tpu.memory_space<vmem>>, vector<64x512xf32>,
    %cst_13 = arith.constant 0.000000e+00 : f32
    %14 = vector.broadcast %cst_13 : f32 to vector<8x128xf32>
    %cst_14 = arith.constant 0.000000e+00 : f32
    %15 = vector.broadcast %cst_14 : f32 to vector<8x128xf32>
    %c0_15 = arith.constant 0 : index
    %c0_16 = arith.constant 0 : index
    %16 = vector.load %arg15[%c0_15, %c0_16] : memref<64x512xf32, #tpu.memory_space<vmem>>, vector<8x512xf32>
    %17 = arith.truncf %14 : vector<8x128xf32> to vector<8x128xbf16>
    %cst_17 = arith.constant dense<0.000000e+00> : vector<8x512xf32>
    %18 = tpu.matmul %17, %6, %cst_17 {dimension_numbers = #tpu.dot_dimension_numbers<[1], [0], [0], [1], [0, 0, 1, 1], [], []>} : vector<8x128xbf16>, vector<128x512xbf16>, vector<8x512xf32> -> vector<8x512xf32>
    %19 = arith.addf %16, %18 : vector<8x512xf32>
    %20 = vector.extract_strided_slice %19 {offsets = [0, 0], sizes = [8, 384], strides = [1, 1]} : vector<8x512xf32> to vector<8x384xf32>
    %cst_18 = arith.constant 5.000000e-01 : f32
    %21 = vector.broadcast %cst_18 : f32 to vector<8x384xf32>
    %22 = arith.mulf %20, %21 : vector<8x384xf32>
    %23 = math.tanh %22 : vector<8x384xf32>
    %cst_19 = arith.constant 5.000000e-01 : f32
    %24 = vector.broadcast %cst_19 : f32 to vector<8x384xf32>
    %25 = arith.mulf %23, %24 : vector<8x384xf32>
    %cst_20 = arith.constant 5.000000e-01 : f32
    %26 = vector.broadcast %cst_20 : f32 to vector<8x384xf32>
    %27 = arith.addf %25, %26 : vector<8x384xf32>
    %28 = vector.extract_strided_slice %19 {offsets = [0, 384], sizes = [8, 128], strides = [1, 1]} : vector<8x512xf32> to vector<8x128xf32>
    %29 = math.tanh %28 : vector<8x128xf32>
    %30 = vector.extract_strided_slice %27 {offsets = [0, 0], sizes = [8, 128], strides = [1, 1]} : vector<8x384xf32> to vector<8x128xf32>
    %31 = vector.extract_strided_slice %27 {offsets = [0, 128], sizes = [8, 128], strides = [1, 1]} : vector<8x384xf32> to vector<8x128xf32>
    %32 = vector.extract_strided_slice %27 {offsets = [0, 256], sizes = [8, 128], strides = [1, 1]} : vector<8x384xf32> to vector<8x128xf32>
    %33 = arith.mulf %31, %15 : vector<8x128xf32>
    %34 = arith.mulf %30, %29 : vector<8x128xf32>
    %35 = arith.addf %33, %34 : vector<8x128xf32>
    %36 = math.tanh %35 : vector<8x128xf32>
    %37 = arith.mulf %32, %36 : vector<8x128xf32>
    %38 = arith.truncf %37 : vector<8x128xf32> to vector<8x128xbf16>
    %c0_21 = arith.constant 0 : index
    %c0_22 = arith.constant 0 : index
    %39 = vector.load %arg14[%c0_21, %c0_22] : memref<64x128xbf16, #tpu.memory_space<vmem>>, vector<8x128xbf16>
    tpu.vector_store %arg14[%c0_21, %c0_22], %38 {strides = array<i32>} : memref<64x128xbf16, #tpu.memory_space<vmem>>, vector<8x128xbf16>,
    %c8 = arith.constant 8 : index
    %c0_23 = arith.constant 0 : index
    %40 = vector.load %arg15[%c8, %c0_23] : memref<64x512xf32, #tpu.memory_space<vmem>>, vector<8x512xf32>
    %41 = arith.truncf %37 : vector<8x128xf32> to vector<8x128xbf16>
    %cst_24 = arith.constant dense<0.000000e+00> : vector<8x512xf32>
    %42 = tpu.matmul %41, %6, %cst_24 {dimension_numbers = #tpu.dot_dimension_numbers<[1], [0], [0], [1], [0, 0, 1, 1], [], []>} : vector<8x128xbf16>, vector<128x512xbf16>, vector<8x512xf32> -> vector<8x512xf32>
    %43 = arith.addf %40, %42 : vector<8x512xf32>
    %44 = vector.extract_strided_slice %43 {offsets = [0, 0], sizes = [8, 384], strides = [1, 1]} : vector<8x512xf32> to vector<8x384xf32>
    %cst_25 = arith.constant 5.000000e-01 : f32
    %45 = vector.broadcast %cst_25 : f32 to vector<8x384xf32>
    %46 = arith.mulf %44, %45 : vector<8x384xf32>
    %47 = math.tanh %46 : vector<8x384xf32>
    %cst_26 = arith.constant 5.000000e-01 : f32
    %48 = vector.broadcast %cst_26 : f32 to vector<8x384xf32>
    %49 = arith.mulf %47, %48 : vector<8x384xf32>
    %cst_27 = arith.constant 5.000000e-01 : f32
    %50 = vector.broadcast %cst_27 : f32 to vector<8x384xf32>
    %51 = arith.addf %49, %50 : vector<8x384xf32>
    %52 = vector.extract_strided_slice %43 {offsets = [0, 384], sizes = [8, 128], strides = [1, 1]} : vector<8x512xf32> to vector<8x128xf32>
    %53 = math.tanh %52 : vector<8x128xf32>
    %54 = vector.extract_strided_slice %51 {offsets = [0, 0], sizes = [8, 128], strides = [1, 1]} : vector<8x384xf32> to vector<8x128xf32>
    %55 = vector.extract_strided_slice %51 {offsets = [0, 128], sizes = [8, 128], strides = [1, 1]} : vector<8x384xf32> to vector<8x128xf32>
    %56 = vector.extract_strided_slice %51 {offsets = [0, 256], sizes = [8, 128], strides = [1, 1]} : vector<8x384xf32> to vector<8x128xf32>
    %57 = arith.mulf %55, %35 : vector<8x128xf32>
    %58 = arith.mulf %54, %53 : vector<8x128xf32>
    %59 = arith.addf %57, %58 : vector<8x128xf32>
    %60 = math.tanh %59 : vector<8x128xf32>
    %61 = arith.mulf %56, %60 : vector<8x128xf32>
    %62 = arith.truncf %61 : vector<8x128xf32> to vector<8x128xbf16>
    %c8_28 = arith.constant 8 : index
    %c0_29 = arith.constant 0 : index
    %63 = vector.load %arg14[%c8_28, %c0_29] : memref<64x128xbf16, #tpu.memory_space<vmem>>, vector<8x128xbf16>
    tpu.vector_store %arg14[%c8_28, %c0_29], %62 {strides = array<i32>} : memref<64x128xbf16, #tpu.memory_space<vmem>>, vector<8x128xbf16>,
    %c16 = arith.constant 16 : index
    %c0_30 = arith.constant 0 : index
    %64 = vector.load %arg15[%c16, %c0_30] : memref<64x512xf32, #tpu.memory_space<vmem>>, vector<8x512xf32>
    %65 = arith.truncf %61 : vector<8x128xf32> to vector<8x128xbf16>
    %cst_31 = arith.constant dense<0.000000e+00> : vector<8x512xf32>
    %66 = tpu.matmul %65, %6, %cst_31 {dimension_numbers = #tpu.dot_dimension_numbers<[1], [0], [0], [1], [0, 0, 1, 1], [], []>} : vector<8x128xbf16>, vector<128x512xbf16>, vector<8x512xf32> -> vector<8x512xf32>
    %67 = arith.addf %64, %66 : vector<8x512xf32>
    %68 = vector.extract_strided_slice %67 {offsets = [0, 0], sizes = [8, 384], strides = [1, 1]} : vector<8x512xf32> to vector<8x384xf32>
    %cst_32 = arith.constant 5.000000e-01 : f32
    %69 = vector.broadcast %cst_32 : f32 to vector<8x384xf32>
    %70 = arith.mulf %68, %69 : vector<8x384xf32>
    %71 = math.tanh %70 : vector<8x384xf32>
    %cst_33 = arith.constant 5.000000e-01 : f32
    %72 = vector.broadcast %cst_33 : f32 to vector<8x384xf32>
    %73 = arith.mulf %71, %72 : vector<8x384xf32>
    %cst_34 = arith.constant 5.000000e-01 : f32
    %74 = vector.broadcast %cst_34 : f32 to vector<8x384xf32>
    %75 = arith.addf %73, %74 : vector<8x384xf32>
    %76 = vector.extract_strided_slice %67 {offsets = [0, 384], sizes = [8, 128], strides = [1, 1]} : vector<8x512xf32> to vector<8x128xf32>
    %77 = math.tanh %76 : vector<8x128xf32>
    %78 = vector.extract_strided_slice %75 {offsets = [0, 0], sizes = [8, 128], strides = [1, 1]} : vector<8x384xf32> to vector<8x128xf32>
    %79 = vector.extract_strided_slice %75 {offsets = [0, 128], sizes = [8, 128], strides = [1, 1]} : vector<8x384xf32> to vector<8x128xf32>
    %80 = vector.extract_strided_slice %75 {offsets = [0, 256], sizes = [8, 128], strides = [1, 1]} : vector<8x384xf32> to vector<8x128xf32>
    %81 = arith.mulf %79, %59 : vector<8x128xf32>
    %82 = arith.mulf %78, %77 : vector<8x128xf32>
    %83 = arith.addf %81, %82 : vector<8x128xf32>
    %84 = math.tanh %83 : vector<8x128xf32>
    %85 = arith.mulf %80, %84 : vector<8x128xf32>
    %86 = arith.truncf %85 : vector<8x128xf32> to vector<8x128xbf16>
    %c16_35 = arith.constant 16 : index
    %c0_36 = arith.constant 0 : index
    %87 = vector.load %arg14[%c16_35, %c0_36] : memref<64x128xbf16, #tpu.memory_space<vmem>>, vector<8x128xbf16>
    tpu.vector_store %arg14[%c16_35, %c0_36], %86 {strides = array<i32>} : memref<64x128xbf16, #tpu.memory_space<vmem>>, vector<8x128xbf16>,
    %c24 = arith.constant 24 : index
    %c0_37 = arith.constant 0 : index
    %88 = vector.load %arg15[%c24, %c0_37] : memref<64x512xf32, #tpu.memory_space<vmem>>, vector<8x512xf32>
    %89 = arith.truncf %85 : vector<8x128xf32> to vector<8x128xbf16>
    %cst_38 = arith.constant dense<0.000000e+00> : vector<8x512xf32>
    %90 = tpu.matmul %89, %6, %cst_38 {dimension_numbers = #tpu.dot_dimension_numbers<[1], [0], [0], [1], [0, 0, 1, 1], [], []>} : vector<8x128xbf16>, vector<128x512xbf16>, vector<8x512xf32> -> vector<8x512xf32>
    %91 = arith.addf %88, %90 : vector<8x512xf32>
    %92 = vector.extract_strided_slice %91 {offsets = [0, 0], sizes = [8, 384], strides = [1, 1]} : vector<8x512xf32> to vector<8x384xf32>
    %cst_39 = arith.constant 5.000000e-01 : f32
    %93 = vector.broadcast %cst_39 : f32 to vector<8x384xf32>
    %94 = arith.mulf %92, %93 : vector<8x384xf32>
    %95 = math.tanh %94 : vector<8x384xf32>
    %cst_40 = arith.constant 5.000000e-01 : f32
    %96 = vector.broadcast %cst_40 : f32 to vector<8x384xf32>
    %97 = arith.mulf %95, %96 : vector<8x384xf32>
    %cst_41 = arith.constant 5.000000e-01 : f32
    %98 = vector.broadcast %cst_41 : f32 to vector<8x384xf32>
    %99 = arith.addf %97, %98 : vector<8x384xf32>
    %100 = vector.extract_strided_slice %91 {offsets = [0, 384], sizes = [8, 128], strides = [1, 1]} : vector<8x512xf32> to vector<8x128xf32>
    %101 = math.tanh %100 : vector<8x128xf32>
    %102 = vector.extract_strided_slice %99 {offsets = [0, 0], sizes = [8, 128], strides = [1, 1]} : vector<8x384xf32> to vector<8x128xf32>
    %103 = vector.extract_strided_slice %99 {offsets = [0, 128], sizes = [8, 128], strides = [1, 1]} : vector<8x384xf32> to vector<8x128xf32>
    %104 = vector.extract_strided_slice %99 {offsets = [0, 256], sizes = [8, 128], strides = [1, 1]} : vector<8x384xf32> to vector<8x128xf32>
    %105 = arith.mulf %103, %83 : vector<8x128xf32>
    %106 = arith.mulf %102, %101 : vector<8x128xf32>
    %107 = arith.addf %105, %106 : vector<8x128xf32>
    %108 = math.tanh %107 : vector<8x128xf32>
    %109 = arith.mulf %104, %108 : vector<8x128xf32>
    %110 = arith.truncf %109 : vector<8x128xf32> to vector<8x128xbf16>
    %c24_42 = arith.constant 24 : index
    %c0_43 = arith.constant 0 : index
    %111 = vector.load %arg14[%c24_42, %c0_43] : memref<64x128xbf16, #tpu.memory_space<vmem>>, vector<8x128xbf16>
    tpu.vector_store %arg14[%c24_42, %c0_43], %110 {strides = array<i32>} : memref<64x128xbf16, #tpu.memory_space<vmem>>, vector<8x128xbf16>,
    %c32 = arith.constant 32 : index
    %c0_44 = arith.constant 0 : index
    %112 = vector.load %arg15[%c32, %c0_44] : memref<64x512xf32, #tpu.memory_space<vmem>>, vector<8x512xf32>
    %113 = arith.truncf %109 : vector<8x128xf32> to vector<8x128xbf16>
    %cst_45 = arith.constant dense<0.000000e+00> : vector<8x512xf32>
    %114 = tpu.matmul %113, %6, %cst_45 {dimension_numbers = #tpu.dot_dimension_numbers<[1], [0], [0], [1], [0, 0, 1, 1], [], []>} : vector<8x128xbf16>, vector<128x512xbf16>, vector<8x512xf32> -> vector<8x512xf32>
    %115 = arith.addf %112, %114 : vector<8x512xf32>
    %116 = vector.extract_strided_slice %115 {offsets = [0, 0], sizes = [8, 384], strides = [1, 1]} : vector<8x512xf32> to vector<8x384xf32>
    %cst_46 = arith.constant 5.000000e-01 : f32
    %117 = vector.broadcast %cst_46 : f32 to vector<8x384xf32>
    %118 = arith.mulf %116, %117 : vector<8x384xf32>
    %119 = math.tanh %118 : vector<8x384xf32>
    %cst_47 = arith.constant 5.000000e-01 : f32
    %120 = vector.broadcast %cst_47 : f32 to vector<8x384xf32>
    %121 = arith.mulf %119, %120 : vector<8x384xf32>
    %cst_48 = arith.constant 5.000000e-01 : f32
    %122 = vector.broadcast %cst_48 : f32 to vector<8x384xf32>
    %123 = arith.addf %121, %122 : vector<8x384xf32>
    %124 = vector.extract_strided_slice %115 {offsets = [0, 384], sizes = [8, 128], strides = [1, 1]} : vector<8x512xf32> to vector<8x128xf32>
    %125 = math.tanh %124 : vector<8x128xf32>
    %126 = vector.extract_strided_slice %123 {offsets = [0, 0], sizes = [8, 128], strides = [1, 1]} : vector<8x384xf32> to vector<8x128xf32>
    %127 = vector.extract_strided_slice %123 {offsets = [0, 128], sizes = [8, 128], strides = [1, 1]} : vector<8x384xf32> to vector<8x128xf32>
    %128 = vector.extract_strided_slice %123 {offsets = [0, 256], sizes = [8, 128], strides = [1, 1]} : vector<8x384xf32> to vector<8x128xf32>
    %129 = arith.mulf %127, %107 : vector<8x128xf32>
    %130 = arith.mulf %126, %125 : vector<8x128xf32>
    %131 = arith.addf %129, %130 : vector<8x128xf32>
    %132 = math.tanh %131 : vector<8x128xf32>
    %133 = arith.mulf %128, %132 : vector<8x128xf32>
    %134 = arith.truncf %133 : vector<8x128xf32> to vector<8x128xbf16>
    %c32_49 = arith.constant 32 : index
    %c0_50 = arith.constant 0 : index
    %135 = vector.load %arg14[%c32_49, %c0_50] : memref<64x128xbf16, #tpu.memory_space<vmem>>, vector<8x128xbf16>
    tpu.vector_store %arg14[%c32_49, %c0_50], %134 {strides = array<i32>} : memref<64x128xbf16, #tpu.memory_space<vmem>>, vector<8x128xbf16>,
    %c40 = arith.constant 40 : index
    %c0_51 = arith.constant 0 : index
    %136 = vector.load %arg15[%c40, %c0_51] : memref<64x512xf32, #tpu.memory_space<vmem>>, vector<8x512xf32>
    %137 = arith.truncf %133 : vector<8x128xf32> to vector<8x128xbf16>
    %cst_52 = arith.constant dense<0.000000e+00> : vector<8x512xf32>
    %138 = tpu.matmul %137, %6, %cst_52 {dimension_numbers = #tpu.dot_dimension_numbers<[1], [0], [0], [1], [0, 0, 1, 1], [], []>} : vector<8x128xbf16>, vector<128x512xbf16>, vector<8x512xf32> -> vector<8x512xf32>
    %139 = arith.addf %136, %138 : vector<8x512xf32>
    %140 = vector.extract_strided_slice %139 {offsets = [0, 0], sizes = [8, 384], strides = [1, 1]} : vector<8x512xf32> to vector<8x384xf32>
    %cst_53 = arith.constant 5.000000e-01 : f32
    %141 = vector.broadcast %cst_53 : f32 to vector<8x384xf32>
    %142 = arith.mulf %140, %141 : vector<8x384xf32>
    %143 = math.tanh %142 : vector<8x384xf32>
    %cst_54 = arith.constant 5.000000e-01 : f32
    %144 = vector.broadcast %cst_54 : f32 to vector<8x384xf32>
    %145 = arith.mulf %143, %144 : vector<8x384xf32>
    %cst_55 = arith.constant 5.000000e-01 : f32
    %146 = vector.broadcast %cst_55 : f32 to vector<8x384xf32>
    %147 = arith.addf %145, %146 : vector<8x384xf32>
    %148 = vector.extract_strided_slice %139 {offsets = [0, 384], sizes = [8, 128], strides = [1, 1]} : vector<8x512xf32> to vector<8x128xf32>
    %149 = math.tanh %148 : vector<8x128xf32>
    %150 = vector.extract_strided_slice %147 {offsets = [0, 0], sizes = [8, 128], strides = [1, 1]} : vector<8x384xf32> to vector<8x128xf32>
    %151 = vector.extract_strided_slice %147 {offsets = [0, 128], sizes = [8, 128], strides = [1, 1]} : vector<8x384xf32> to vector<8x128xf32>
    %152 = vector.extract_strided_slice %147 {offsets = [0, 256], sizes = [8, 128], strides = [1, 1]} : vector<8x384xf32> to vector<8x128xf32>
    %153 = arith.mulf %151, %131 : vector<8x128xf32>
    %154 = arith.mulf %150, %149 : vector<8x128xf32>
    %155 = arith.addf %153, %154 : vector<8x128xf32>
    %156 = math.tanh %155 : vector<8x128xf32>
    %157 = arith.mulf %152, %156 : vector<8x128xf32>
    %158 = arith.truncf %157 : vector<8x128xf32> to vector<8x128xbf16>
    %c40_56 = arith.constant 40 : index
    %c0_57 = arith.constant 0 : index
    %159 = vector.load %arg14[%c40_56, %c0_57] : memref<64x128xbf16, #tpu.memory_space<vmem>>, vector<8x128xbf16>
    tpu.vector_store %arg14[%c40_56, %c0_57], %158 {strides = array<i32>} : memref<64x128xbf16, #tpu.memory_space<vmem>>, vector<8x128xbf16>,
    %c48 = arith.constant 48 : index
    %c0_58 = arith.constant 0 : index
    %160 = vector.load %arg15[%c48, %c0_58] : memref<64x512xf32, #tpu.memory_space<vmem>>, vector<8x512xf32>
    %161 = arith.truncf %157 : vector<8x128xf32> to vector<8x128xbf16>
    %cst_59 = arith.constant dense<0.000000e+00> : vector<8x512xf32>
    %162 = tpu.matmul %161, %6, %cst_59 {dimension_numbers = #tpu.dot_dimension_numbers<[1], [0], [0], [1], [0, 0, 1, 1], [], []>} : vector<8x128xbf16>, vector<128x512xbf16>, vector<8x512xf32> -> vector<8x512xf32>
    %163 = arith.addf %160, %162 : vector<8x512xf32>
    %164 = vector.extract_strided_slice %163 {offsets = [0, 0], sizes = [8, 384], strides = [1, 1]} : vector<8x512xf32> to vector<8x384xf32>
    %cst_60 = arith.constant 5.000000e-01 : f32
    %165 = vector.broadcast %cst_60 : f32 to vector<8x384xf32>
    %166 = arith.mulf %164, %165 : vector<8x384xf32>
    %167 = math.tanh %166 : vector<8x384xf32>
    %cst_61 = arith.constant 5.000000e-01 : f32
    %168 = vector.broadcast %cst_61 : f32 to vector<8x384xf32>
    %169 = arith.mulf %167, %168 : vector<8x384xf32>
    %cst_62 = arith.constant 5.000000e-01 : f32
    %170 = vector.broadcast %cst_62 : f32 to vector<8x384xf32>
    %171 = arith.addf %169, %170 : vector<8x384xf32>
    %172 = vector.extract_strided_slice %163 {offsets = [0, 384], sizes = [8, 128], strides = [1, 1]} : vector<8x512xf32> to vector<8x128xf32>
    %173 = math.tanh %172 : vector<8x128xf32>
    %174 = vector.extract_strided_slice %171 {offsets = [0, 0], sizes = [8, 128], strides = [1, 1]} : vector<8x384xf32> to vector<8x128xf32>
    %175 = vector.extract_strided_slice %171 {offsets = [0, 128], sizes = [8, 128], strides = [1, 1]} : vector<8x384xf32> to vector<8x128xf32>
    %176 = vector.extract_strided_slice %171 {offsets = [0, 256], sizes = [8, 128], strides = [1, 1]} : vector<8x384xf32> to vector<8x128xf32>
    %177 = arith.mulf %175, %155 : vector<8x128xf32>
    %178 = arith.mulf %174, %173 : vector<8x128xf32>
    %179 = arith.addf %177, %178 : vector<8x128xf32>
    %180 = math.tanh %179 : vector<8x128xf32>
    %181 = arith.mulf %176, %180 : vector<8x128xf32>
    %182 = arith.truncf %181 : vector<8x128xf32> to vector<8x128xbf16>
    %c48_63 = arith.constant 48 : index
    %c0_64 = arith.constant 0 : index
    %183 = vector.load %arg14[%c48_63, %c0_64] : memref<64x128xbf16, #tpu.memory_space<vmem>>, vector<8x128xbf16>
    tpu.vector_store %arg14[%c48_63, %c0_64], %182 {strides = array<i32>} : memref<64x128xbf16, #tpu.memory_space<vmem>>, vector<8x128xbf16>,
    %c56 = arith.constant 56 : index
    %c0_65 = arith.constant 0 : index
    %184 = vector.load %arg15[%c56, %c0_65] : memref<64x512xf32, #tpu.memory_space<vmem>>, vector<8x512xf32>
    %185 = arith.truncf %181 : vector<8x128xf32> to vector<8x128xbf16>
    %cst_66 = arith.constant dense<0.000000e+00> : vector<8x512xf32>
    %186 = tpu.matmul %185, %6, %cst_66 {dimension_numbers = #tpu.dot_dimension_numbers<[1], [0], [0], [1], [0, 0, 1, 1], [], []>} : vector<8x128xbf16>, vector<128x512xbf16>, vector<8x512xf32> -> vector<8x512xf32>
    %187 = arith.addf %184, %186 : vector<8x512xf32>
    %188 = vector.extract_strided_slice %187 {offsets = [0, 0], sizes = [8, 384], strides = [1, 1]} : vector<8x512xf32> to vector<8x384xf32>
    %cst_67 = arith.constant 5.000000e-01 : f32
    %189 = vector.broadcast %cst_67 : f32 to vector<8x384xf32>
    %190 = arith.mulf %188, %189 : vector<8x384xf32>
    %191 = math.tanh %190 : vector<8x384xf32>
    %cst_68 = arith.constant 5.000000e-01 : f32
    %192 = vector.broadcast %cst_68 : f32 to vector<8x384xf32>
    %193 = arith.mulf %191, %192 : vector<8x384xf32>
    %cst_69 = arith.constant 5.000000e-01 : f32
    %194 = vector.broadcast %cst_69 : f32 to vector<8x384xf32>
    %195 = arith.addf %193, %194 : vector<8x384xf32>
    %196 = vector.extract_strided_slice %187 {offsets = [0, 384], sizes = [8, 128], strides = [1, 1]} : vector<8x512xf32> to vector<8x128xf32>
    %197 = math.tanh %196 : vector<8x128xf32>
    %198 = vector.extract_strided_slice %195 {offsets = [0, 0], sizes = [8, 128], strides = [1, 1]} : vector<8x384xf32> to vector<8x128xf32>
    %199 = vector.extract_strided_slice %195 {offsets = [0, 128], sizes = [8, 128], strides = [1, 1]} : vector<8x384xf32> to vector<8x128xf32>
    %200 = vector.extract_strided_slice %195 {offsets = [0, 256], sizes = [8, 128], strides = [1, 1]} : vector<8x384xf32> to vector<8x128xf32>
    %201 = arith.mulf %199, %179 : vector<8x128xf32>
    %202 = arith.mulf %198, %197 : vector<8x128xf32>
    %203 = arith.addf %201, %202 : vector<8x128xf32>
    %204 = math.tanh %203 : vector<8x128xf32>
    %205 = arith.mulf %200, %204 : vector<8x128xf32>
    %206 = arith.truncf %205 : vector<8x128xf32> to vector<8x128xbf16>
    %c56_70 = arith.constant 56 : index
    %c0_71 = arith.constant 0 : index
    %207 = vector.load %arg14[%c56_70, %c0_71] : memref<64x128xbf16, #tpu.memory_space<vmem>>, vector<8x128xbf16>
    tpu.vector_store %arg14[%c56_70, %c0_71], %206 {strides = array<i32>} : memref<64x128xbf16, #tpu.memory_space<vmem>>, vector<8x128xbf16>,
    %c2_i32 = arith.constant 2 : i32
    %208 = arith.cmpi eq, %arg0, %c2_i32 : i32
    %209 = arith.extui %208 : i1 to i32
    %c0_i32_72 = arith.constant 0 : i32
    %210 = arith.cmpi ne, %209, %c0_i32_72 : i32
    scf.if %210 {
      %c0_73 = arith.constant 0 : index
      %c0_74 = arith.constant 0 : index
      %211 = vector.load %arg9[%c0_73, %c0_74] : memref<128x128xbf16, #tpu.memory_space<vmem>>, vector<128x128xbf16>
      %212 = arith.truncf %205 : vector<8x128xf32> to vector<8x128xbf16>
      %cst_75 = arith.constant dense<0.000000e+00> : vector<8x128xf32>
      %213 = tpu.matmul %212, %211, %cst_75 {dimension_numbers = #tpu.dot_dimension_numbers<[1], [0], [0], [1], [0, 0, 1, 1], [], []>} : vector<8x128xbf16>, vector<128x128xbf16>, vector<8x128xf32> -> vector<8x128xf32>
      %c0_76 = arith.constant 0 : index
      %c0_77 = arith.constant 0 : index
      %214 = vector.load %arg10[%c0_76, %c0_77] : memref<1x128xf32, #tpu.memory_space<vmem>>, vector<1x128xf32>
      %215 = vector.broadcast %214 : vector<1x128xf32> to vector<8x128xf32>
      %216 = arith.addf %213, %215 : vector<8x128xf32>
      %cst_78 = arith.constant 0.000000e+00 : f32
      %217 = vector.broadcast %cst_78 : f32 to vector<8x128xf32>
      %218 = arith.maximumf %216, %217 : vector<8x128xf32>
      %c0_79 = arith.constant 0 : index
      %c0_80 = arith.constant 0 : index
      %219 = vector.load %arg11[%c0_79, %c0_80] : memref<128x128xbf16, #tpu.memory_space<vmem>>, vector<128x128xbf16>
      %220 = arith.truncf %218 : vector<8x128xf32> to vector<8x128xbf16>
      %cst_81 = arith.constant dense<0.000000e+00> : vector<8x128xf32>
      %221 = tpu.matmul %220, %219, %cst_81 {dimension_numbers = #tpu.dot_dimension_numbers<[1], [0], [0], [1], [0, 0, 1, 1], [], []>} : vector<8x128xbf16>, vector<128x128xbf16>, vector<8x128xf32> -> vector<8x128xf32>
      %c0_82 = arith.constant 0 : index
      %c0_83 = arith.constant 0 : index
      %222 = vector.load %arg12[%c0_82, %c0_83] : memref<1x128xf32, #tpu.memory_space<vmem>>, vector<1x128xf32>
      %223 = vector.broadcast %222 : vector<1x128xf32> to vector<8x128xf32>
      %224 = arith.addf %221, %223 : vector<8x128xf32>
      %c0_84 = arith.constant 0 : index
      %c0_85 = arith.constant 0 : index
      %225 = vector.load %arg13[%c0_84, %c0_85] : memref<8x128xf32, #tpu.memory_space<vmem>>, vector<8x128xf32>
      tpu.vector_store %arg13[%c0_84, %c0_85], %224 {strides = array<i32>} : memref<8x128xf32, #tpu.memory_space<vmem>>, vector<8x128xf32>,
    } else {
    }
    return
  }
  func.func @transform_0(%arg0: i32) -> (i32, i32) {
    %c0_i32 = arith.constant 0 : i32
    %c0_i32_0 = arith.constant 0 : i32
    %c0_i32_1 = arith.constant 0 : i32
    return %c0_i32, %c0_i32_0 : i32, i32
  }
  func.func @transform_1(%arg0: i32) -> (i32, i32) {
    %c0_i32 = arith.constant 0 : i32
    %c0_i32_0 = arith.constant 0 : i32
    %c0_i32_1 = arith.constant 0 : i32
    return %c0_i32, %c0_i32_0 : i32, i32
  }
  func.func @transform_2(%arg0: i32) -> (i32, i32) {
    %c0_i32 = arith.constant 0 : i32
    %c0_i32_0 = arith.constant 0 : i32
    %c0_i32_1 = arith.constant 0 : i32
    return %c0_i32, %c0_i32_0 : i32, i32
  }
  func.func @transform_3(%arg0: i32) -> (i32, i32) {
    %c0_i32 = arith.constant 0 : i32
    %c0_i32_0 = arith.constant 0 : i32
    %c0_i32_1 = arith.constant 0 : i32
    return %c0_i32, %c0_i32_0 : i32, i32
  }
  func.func @transform_4(%arg0: i32) -> (i32, i32) {
    %c0_i32 = arith.constant 0 : i32
    %c0_i32_0 = arith.constant 0 : i32
    %c0_i32_1 = arith.constant 0 : i32
    return %c0_i32, %c0_i32_0 : i32, i32
  }
  func.func @transform_5(%arg0: i32) -> (i32, i32, i32) {
    %c0_i32 = arith.constant 0 : i32
    %c0_i32_0 = arith.constant 0 : i32
    %c0_i32_1 = arith.constant 0 : i32
    return %arg0, %c0_i32, %c0_i32_0 : i32, i32, i32
  }
  func.func @transform_6(%arg0: i32) -> (i32, i32, i32) {
    %c0_i32 = arith.constant 0 : i32
    %c0_i32_0 = arith.constant 0 : i32
    %c0_i32_1 = arith.constant 0 : i32
    return %arg0, %c0_i32, %c0_i32_0 : i32, i32, i32
  }
  func.func @transform_7(%arg0: i32) -> (i32, i32, i32) {
    %c0_i32 = arith.constant 0 : i32
    %c0_i32_0 = arith.constant 0 : i32
    %c0_i32_1 = arith.constant 0 : i32
    return %arg0, %c0_i32, %c0_i32_0 : i32, i32, i32
  }
  func.func @transform_8(%arg0: i32) -> (i32, i32) {
    %c0_i32 = arith.constant 0 : i32
    %c0_i32_0 = arith.constant 0 : i32
    %c0_i32_1 = arith.constant 0 : i32
    return %c0_i32, %c0_i32_0 : i32, i32
  }
  func.func @transform_9(%arg0: i32) -> (i32, i32) {
    %c0_i32 = arith.constant 0 : i32
    %c0_i32_0 = arith.constant 0 : i32
    %c0_i32_1 = arith.constant 0 : i32
    return %c0_i32, %c0_i32_0 : i32, i32
  }
  func.func @transform_10(%arg0: i32) -> (i32, i32) {
    %c0_i32 = arith.constant 0 : i32
    %c0_i32_0 = arith.constant 0 : i32
    %c0_i32_1 = arith.constant 0 : i32
    return %c0_i32, %c0_i32_0 : i32, i32
  }
  func.func @transform_11(%arg0: i32) -> (i32, i32) {
    %c0_i32 = arith.constant 0 : i32
    %c0_i32_0 = arith.constant 0 : i32
    %c0_i32_1 = arith.constant 0 : i32
    return %c0_i32, %c0_i32_0 : i32, i32
  }
  func.func @transform_12(%arg0: i32) -> (i32, i32) {
    %c0_i32 = arith.constant 0 : i32
    %c0_i32_0 = arith.constant 0 : i32
    %c0_i32_1 = arith.constant 0 : i32
    return %c0_i32, %c0_i32_0 : i32, i32
  }
}

</mosaic_0001>

<bundles_post_ra>
// kernel: lstm_model_forward.1
= control target key start
LH: loop header
LB: loop body
LE: loop exit
PB: predicated region body
PF: predicated region fallthrough
CT: control target
= control target key end

     0   :  { %s4533_s0 = inlined_call_operand.vmem [shape: f32[64,4], index: 0, kind: input, shape index: {}]   ;;  %s4534_s1 = inlined_call_operand.vmem [shape: f32[4,128], index: 1, kind: input, shape index: {}]   ;;  %s4535_s2 = inlined_call_operand.vmem [shape: f32[1,128], index: 2, kind: input, shape index: {}]   ;;  %s4536_s3 = inlined_call_operand.vmem [shape: bf16[128,128], index: 3, kind: input, shape index: {}]   ;;  %s4537_s4 = inlined_call_operand.vmem [shape: f32[1,128], index: 4, kind: input, shape index: {}]   ;;  %s4538_s5 = inlined_call_operand.hbm [shape: bf16[3,128,512], index: 5, kind: input, shape index: {}]   ;;  %s4539_s6 = inlined_call_operand.hbm [shape: bf16[3,128,512], index: 6, kind: input, shape index: {}]   ;;  %s4540_s7 = inlined_call_operand.hbm [shape: f32[3,1,512], index: 7, kind: input, shape index: {}]   ;;  %s4541_s8 = inlined_call_operand.vmem [shape: bf16[128,128], index: 8, kind: input, shape index: {}]   ;;  %s4542_s9 = inlined_call_operand.vmem [shape: f32[1,128], index: 9, kind: input, shape index: {}]   ;;  %s4543_s10 = inlined_call_operand.hbm [shape: bf16[128,128], index: 10, kind: input, shape index: {}]   ;;  %s4544_s11 = inlined_call_operand.hbm [shape: f32[1,128], index: 11, kind: input, shape index: {}]   ;;  %s4545_s12 = inlined_call_operand.vmem [shape: f32[8,128], index: 12, kind: output, shape index: {}]  }
   0x1   :  { %4564 = sst [smem:[#allocation39_spill]] %s4537_s4 }
   0x2   :  { %4565 = sst [smem:[#allocation40_spill]] %s4538_s5 }
   0x3   :  { %4566 = sst [smem:[#allocation41_spill]] %s4539_s6 }
   0x4   :  { %4567 = sst [smem:[#allocation42_spill]] %s4541_s8 }
   0x5   :  { %4568 = sst [smem:[#allocation43_spill]] %s4542_s9 }
   0x6   :  { %4569 = sst [smem:[#allocation44_spill]] %s4543_s10 }
   0x7   :  { %4570 = sst [smem:[#allocation45_spill]] %s4544_s11 }
   0x8   :  { %4571 = sst [smem:[#allocation46_spill]] %s4545_s12 }
   0x9   :  { %17 = vsyncpa [#allocation5], 0 }
   0xa   :  { %19 = vsyncpa [#allocation5 + $0x1], 0 }
   0xb   :  { %20 = vsyncpa [#allocation7], 0 }
   0xc   :  { %22 = vsyncpa [#allocation7 + $0x1], 0 }
   0xd   :  { %23 = vsyncpa [#allocation10], 0  ;;  %s3552_s21 = smov 0   ;;  %s3554_s22 = smov 0  }
   0xe   :  { %s3556_s23 = smov 0   ;;  %s3558_s24 = smov 0  }
   0xf LB: > { %4572 = sst [smem:[#allocation15_spill]] %s3465_s23  ;;  %s3571_s25 = sadd.s32 4294967295, %s3469_s24   ;;  %s3469_s24 = sphi %s3558_s24, %s4649_s24   ;;  %s3465_s23 = sphi %s3556_s23, %s4651_s23   ;;  %s3461_s22 = sphi %s3554_s22, %s4653_s22   ;;  %s3457_s21 = sphi %s3552_s21, %s4652_s21  }
  0x10   : > { %s3574_s26 = sadd.s32 1, %s3469_s24   ;;  %s141_s28 = sadd.s32 1, %s3465_s23 }
  0x11   : > { %4573 = sst [smem:[#allocation16_spill]] %s3574_s26  ;;  %s138_s27 = ssub.s32 %s3469_s24, %s3574_s26 }
  0x12   : > { %p139_p0 = scmp.eq.s32.totalorder %s138_s27, 0  ;;  %p148_p1 = scmp.ne.s32.totalorder %s3465_s23, %s3461_s22 }
  0x13   : > { %p149_p2 = scmp.eq.s32.totalorder %s3469_s24, 0  ;;  %p154_p3 = scmp.ne.s32.totalorder %s3461_s22, %s3457_s21 }
  0x14   : > { %s3584_s29 = scalar_select %p139_p0, %s3465_s23, %s141_s28  }
  0x15   : > { %p3586_p4 = por %p149_p2, %p148_p1  ;;  %p4549_p5 = scmp.eq.s32.totalorder %s3571_s25, 0 }
  0x16   : > { %4574 = sst [smem:[#allocation17_spill]] %s3584_s29  ;;  %p2728_p6 = scmp.ge.s32.totalorder %s3469_s24, 1 }
  0x17   : > { %s4575_s30 = scalar_select %p3586_p4, 1, 0 }
  0x18   : > { %p322_p7 = scmp.lt.s32.totalorder %s3469_s24, 4  ;;  %p3595_p8 = por %p4549_p5, %p154_p3 }
  0x19   : > { %s3471_s15 = smov [#allocation9]   ;;  %s3614_s18 = sand.u32 1, %s3465_s23  }
  0x1a   : > { %s4576_s13 = scalar_select %p3595_p8, 1, 0 }
  0x1b   : > { %p3600_p10 = pnand %p2728_p6, %p322_p7  ;;  %s355_s16 = sshll.u32 %s3471_s15, 4  ;;  %s356_s16 = int_to_ptr.vmem [resolvable:$true] %s355_s16 }
  0x1c   : > { %s4552_s19 = sshll.u32 %s3469_s24, 12  ;;  %s4579_s10 = sld [smem:[#allocation44_spill]] }
  0x1d   : > { %s4577_s14 = scalar_select %p3600_p10, 1, 0 }
  0x1e   : > { %p2974_p11 = pneg %p3600_p10 }
  0x20   : > { %p3608_p12 = pnand %p2974_p11, %p4549_p5 }
  0x22   : > { %s4578_s17 = scalar_select %p3608_p12, 1, 0 }
  0x23   : > { %s3281_s28 = scalar_lea.hbm %s4579_s10, 1024  ;;  %p4553_p1 = pneg %p3608_p12 }
  0x24   : > { %p3282_p0 = scmp.ne.s32.totalorder %s4579_s10, %s3281_s28  ;;  %p3288_p6 = scmp.lt.u32.totalorder %s3281_s28, %s4579_s10 }
  0x26   : > { %p3284_p2 = pnand %p4553_p1, %p3282_p0 }
  0x28   : > { %p3285_p3 = pneg %p3284_p2 }
  0x2a   : > { %p3290_p7 = pnand %p3288_p6, %p3285_p3 }
  0x2c   : > { %3293 = shalt.err (!%p3290_p7)
}
  0x2d   : > { %s3294_s20 = scalar_lea.vmem %s356_s16, 1024  ;;  %p3302_p13 = scmp.lt.s32.totalorder %s356_s16, %s356_s16 }
  0x2e   : > { %p3295_p11 = scmp.ne.s32.totalorder %s356_s16, %s3294_s20  ;;  %p3303_p8 = scmp.lt.s32.totalorder %s3294_s20, %s3294_s20 }
  0x30   : > { %p3297_p9 = pnand %p3295_p11, %p4553_p1  ;;  %p3304_p10 = por %p3303_p8, %p3302_p13 }
  0x32   : > { %p3298_p5 = pneg %p3297_p9 }
  0x34   : > { %p3305_p4 = pnand %p3304_p10, %p3298_p5 }
  0x36   : > { %3308 = shalt.err (!%p3305_p4)
}
  0x37   : > { %s3472_s29 = smov 64   ;;  %s3473_s23 = smov 4  }
  0x38   : > { %2977 = dma.hbm_to_vmem [thread:$0]  (!%p3608_p12), %s4579_s10, 1024, %s356_s16, [#allocation10], %s3472_s29, %s3472_s29, %s3473_s23  }
  0x39   : > { %p4580_p0 = scmp.ne.s32.totalorder %s4575_s30, 0  ;;  %p4581_p9 = scmp.lt.s32.totalorder %s3469_s24, 3 }
  0x3a   : > { %s401_s27 = sand.u32 1, %s3469_s24   ;;  %s4583_s6 = sld [smem:[#allocation41_spill]] }
  0x3b   : > { %p3644_p2 = pnand %p4581_p9, %p4580_p0  ;;  %s4584_s9 = sshll.u32 %s3614_s18, 8 }
  0x3c   : > { %s405_s16 = scalar_lea.vmem [#allocation6], %s4584_s9  ;;  %s3474_s29 = smov [#allocation11]  }
  0x3d   : > { %s4582_s20 = scalar_select %p3644_p2, 1, 0 }
  0x3e   : > { %s412_s30 = sshll.u32 %s405_s16, 4  ;;  %s3660_s23 = sshll.u32 %s3474_s29, 4  ;;  %s3658_s30 = int_to_ptr.vmem [resolvable:$true] %s412_s30  ;;  %s370_s23 = int_to_ptr.vmem [resolvable:$true] %s3660_s23 }
  0x3f   : > { %s3662_s26 = scalar_lea.sflag [#allocation7], %s401_s27  ;;  %p3668_p5 = pneg %p3644_p2 }
  0x40   : > { %s3654_s12 = scalar_lea.hbm %s4583_s6, %s4552_s19  ;;  %s3314_s16 = scalar_lea.hbm %s4583_s6, 12288 }
  0x41   : > { %s3309_s21 = scalar_lea.hbm %s3654_s12, 4096  ;;  %p3315_p13 = scmp.lt.u32.totalorder %s3654_s12, %s4583_s6 }
  0x42   : > { %p3310_p4 = scmp.ne.s32.totalorder %s3654_s12, %s3309_s21  ;;  %p3316_p3 = scmp.lt.u32.totalorder %s3314_s16, %s3309_s21 }
  0x43   : > { %s4585_s28 = scalar_select %p3668_p5, 1, 0 }
  0x44   : > { %p3312_p8 = pnand %p3668_p5, %p3310_p4  ;;  %p3317_p6 = por %p3316_p3, %p3315_p13 }
  0x45   : > { %p3318_p7 = scmp.lt.u32.totalorder %s3309_s21, %s3654_s12 }
  0x46   : > { %p3313_p10 = pneg %p3312_p8 }
  0x47   : > { %p3319_p11 = por %p3318_p7, %p3317_p6 }
  0x49   : > { %p3320_p0 = pnand %p3319_p11, %p3313_p10 }
  0x4b   : > { %3323 = shalt.err (!%p3320_p0)
}
  0x4c   : > { %s3324_s27 = scalar_lea.vmem %s3658_s30, 4096  ;;  %s3475_s9 = smov [#allocation6]  }
  0x4d   : > { %p3325_p9 = scmp.ne.s32.totalorder %s3658_s30, %s3324_s27  ;;  %s3329_s15 = sshll.u32 %s3475_s9, 4  ;;  %s3330_s15 = int_to_ptr.vmem [resolvable:$false] %s3329_s15 }
  0x4e   : > { %s3331_s19 = scalar_lea.vmem %s3330_s15, 8192  ;;  %p3332_p1 = scmp.lt.s32.totalorder %s3658_s30, %s3330_s15 }
  0x4f   : > { %p3327_p4 = pnand %p3325_p9, %p3668_p5  ;;  %p3333_p12 = scmp.lt.s32.totalorder %s3331_s19, %s3324_s27 }
  0x51   : > { %p3328_p8 = pneg %p3327_p4  ;;  %p3334_p13 = por %p3333_p12, %p3332_p1 }
  0x53   : > { %p3335_p3 = pnand %p3334_p13, %p3328_p8 }
  0x55   : > { %3338 = shalt.err (!%p3335_p3)
}
  0x56   : > { %s4560_s21 = smov 256   ;;  %s3477_s16 = smov 16  }
  0x57   : > { %2987 = dma.hbm_to_vmem [thread:$0]  (!%p3644_p2), %s3654_s12, 4096, %s3658_s30, %s3662_s26, %s4560_s21, %s4560_s21, %s3477_s16  }
  0x58   : > { %s4586_s11 = sld [smem:[#allocation45_spill]]  ;;  %p4587_p1 = scmp.ne.s32.totalorder %s4578_s17, 0 }
  0x5a   : > { %p4588_p10 = pneg %p4587_p1 }
  0x5e   : > { %s3339_s27 = scalar_lea.hbm %s4586_s11, 16 }
  0x5f   : > { %p3340_p12 = scmp.ne.s32.totalorder %s4586_s11, %s3339_s27  ;;  %p3346_p11 = scmp.lt.u32.totalorder %s3339_s27, %s4586_s11 }
  0x61   : > { %p3342_p6 = pnand %p3340_p12, %p4588_p10 }
  0x63   : > { %p3343_p7 = pneg %p3342_p6 }
  0x65   : > { %p3348_p0 = pnand %p3346_p11, %p3343_p7 }
  0x67   : > { %3351 = shalt.err (!%p3348_p0)
}
  0x68   : > { %s3352_s12 = scalar_lea.vmem %s370_s23, 16  ;;  %p4589_p4 = pmov %p4588_p10 }
  0x69   : > { %p3353_p9 = scmp.ne.s32.totalorder %s370_s23, %s3352_s12  ;;  %s3359_s30 = scalar_lea.vmem %s370_s23, 32 }
  0x6a   : > { %p3360_p3 = scmp.lt.s32.totalorder %s370_s23, %s370_s23  ;;  %p3361_p2 = scmp.lt.s32.totalorder %s3359_s30, %s3352_s12 }
  0x6b   : > { %p3355_p8 = pnand %p3353_p9, %p4589_p4 }
  0x6c   : > { %p3362_p5 = por %p3361_p2, %p3360_p3 }
  0x6d   : > { %p3356_p13 = pneg %p3355_p8 }
  0x6f   : > { %p3363_p10 = pnand %p3362_p5, %p3356_p13 }
  0x71   : > { %3366 = shalt.err (!%p3363_p10)
}
  0x72   : > { %2980 = dma.hbm_to_vmem [thread:$0]  (!%p4587_p1), %s4586_s11, 16, %s370_s23, [#allocation10]  }
  0x73   : > { %s4590_s10 = sshll.u32 %s3469_s24, 12  ;;  %s4591_s5 = sld [smem:[#allocation40_spill]] }
  0x74   : > { %s4592_s19 = sshll.u32 %s3614_s18, 8  ;;  %s2738_s30 = sshll.u32 %s3614_s18, 2 }
  0x75   : > { %s384_s17 = scalar_lea.vmem [#allocation4], %s4592_s19  ;;  %s381_s29 = scalar_lea.sflag [#allocation5], %s3614_s18 }
  0x76   : > { %s391_s12 = sshll.u32 %s384_s17, 4  ;;  %p4593_p5 = scmp.ne.s32.totalorder %s4585_s28, 0  ;;  %s3726_s12 = int_to_ptr.vmem [resolvable:$true] %s391_s12 }
  0x79   : > { %s3721_s15 = scalar_lea.hbm %s4591_s5, %s4590_s10  ;;  %s3372_s10 = scalar_lea.hbm %s4591_s5, 12288 }
  0x7a   : > { %s3367_s6 = scalar_lea.hbm %s3721_s15, 4096  ;;  %p3373_p6 = scmp.lt.u32.totalorder %s3721_s15, %s4591_s5 }
  0x7b   : > { %p3368_p2 = scmp.ne.s32.totalorder %s3721_s15, %s3367_s6  ;;  %p3374_p7 = scmp.lt.u32.totalorder %s3372_s10, %s3367_s6 }
  0x7c   : > { %p3376_p0 = scmp.lt.u32.totalorder %s3367_s6, %s3721_s15 }
  0x7d   : > { %p3370_p12 = pnand %p3368_p2, %p4593_p5  ;;  %p3375_p11 = por %p3374_p7, %p3373_p6 }
  0x7f   : > { %p3371_p1 = pneg %p3370_p12  ;;  %p3377_p9 = por %p3376_p0, %p3375_p11 }
  0x81   : > { %p3378_p4 = pnand %p3377_p9, %p3371_p1 }
  0x83   : > { %3381 = shalt.err (!%p3378_p4)
}
  0x84   : > { %s3382_s19 = scalar_lea.vmem %s3726_s12, 4096  ;;  %s3478_s17 = smov [#allocation4]  }
  0x85   : > { %p3383_p8 = scmp.ne.s32.totalorder %s3726_s12, %s3382_s19  ;;  %s3387_s23 = sshll.u32 %s3478_s17, 4  ;;  %s3388_s23 = int_to_ptr.vmem [resolvable:$false] %s3387_s23 }
  0x86   : > { %s3389_s21 = scalar_lea.vmem %s3388_s23, 8192  ;;  %p3390_p10 = scmp.lt.s32.totalorder %s3726_s12, %s3388_s23 }
  0x87   : > { %p3385_p13 = pnand %p3383_p8, %p4593_p5  ;;  %p3391_p2 = scmp.lt.s32.totalorder %s3389_s21, %s3382_s19 }
  0x89   : > { %p3386_p3 = pneg %p3385_p13  ;;  %p3392_p12 = por %p3391_p2, %p3390_p10 }
  0x8b   : > { %p3393_p6 = pnand %p3392_p12, %p3386_p3 }
  0x8d   : > { %3396 = shalt.err (!%p3393_p6)
}
  0x8e   : > { %p4594_p1 = scmp.ne.s32.totalorder %s4582_s20, 0  ;;  %s4595_s6 = smov 256  }
  0x8f   : > { %s2849_s9 = sshll.u32 %s3469_s24, 6  ;;  %s426_s10 = scalar_lea.vmem [#allocation8], %s2738_s30 }
  0x90   : > { %2984 = dma.hbm_to_vmem [thread:$0]  (!%p4594_p1), %s3721_s15, 4096, %s3726_s12, %s381_s29, %s4595_s6, %s4595_s6, %s3477_s16  }
  0x91   : > { %s434_s27 = sshll.u32 %s426_s10, 4  ;;  %s432_s23 = scalar_lea.hbm %s4540_s7, %s2849_s9  ;;  %s435_s27 = int_to_ptr.vmem [resolvable:$true] %s434_s27 }
  0x92   : > { %s3397_s21 = scalar_lea.hbm %s432_s23, 64  ;;  %s3402_s8 = scalar_lea.hbm %s4540_s7, 192 }
  0x93   : > { %p3398_p7 = scmp.ne.s32.totalorder %s432_s23, %s3397_s21  ;;  %p3403_p9 = scmp.lt.u32.totalorder %s432_s23, %s4540_s7 }
  0x94   : > { %p3404_p4 = scmp.lt.u32.totalorder %s3402_s8, %s3397_s21  ;;  %p3406_p13 = scmp.lt.u32.totalorder %s3397_s21, %s432_s23 }
  0x95   : > { %p3400_p11 = pnand %p3398_p7, %p4593_p5 }
  0x96   : > { %p3405_p8 = por %p3404_p4, %p3403_p9 }
  0x97   : > { %p3401_p0 = pneg %p3400_p11 }
  0x98   : > { %p3407_p3 = por %p3406_p13, %p3405_p8 }
  0x9a   : > { %p3408_p10 = pnand %p3407_p3, %p3401_p0 }
  0x9c   : > { %3411 = shalt.err (!%p3408_p10)
}
  0x9d   : > { %s3412_s24 = scalar_lea.vmem %s435_s27, 64  ;;  %s3479_s18 = smov [#allocation8]  }
  0x9e   : > { %p3413_p2 = scmp.ne.s32.totalorder %s435_s27, %s3412_s24  ;;  %s3417_s15 = sshll.u32 %s3479_s18, 4  ;;  %s3418_s15 = int_to_ptr.vmem [resolvable:$false] %s3417_s15 }
  0x9f   : > { %s3419_s5 = scalar_lea.vmem %s3418_s15, 128  ;;  %p3420_p7 = scmp.lt.s32.totalorder %s435_s27, %s3418_s15 }
  0xa0   : > { %p3415_p12 = pnand %p3413_p2, %p4593_p5  ;;  %p3421_p11 = scmp.lt.s32.totalorder %s3419_s5, %s3412_s24 }
  0xa2   : > { %p3416_p6 = pneg %p3415_p12  ;;  %p3422_p1 = por %p3421_p11, %p3420_p7 }
  0xa4   : > { %p3423_p4 = pnand %p3422_p1, %p3416_p6 }
  0xa6   : > { %3426 = shalt.err (!%p3423_p4)
}
  0xa7   : > { %p4596_p9 = scmp.ne.s32.totalorder %s4582_s20, 0  ;;  %p4597_p0 = scmp.ne.s32.totalorder %s4577_s14, 0 }
  0xa9   : > { %2990 = dma.hbm_to_vmem [thread:$0]  (!%p4596_p9), %s432_s23, 64, %s435_s27, %s3662_s26  }
  0xaa   : > { %443 = sbr.rel (%p4597_p0) target bundleno = 3120 (0xc30), region = 68 }
  0xb1   : > { %s445_s4 = sand.u32 1, %s3461_s22   ;;  %p4598_p5 = scmp.ne.s32.totalorder %s4576_s13, 0 }
  0xb2   : > { %s2742_s8 = sshll.u32 %s445_s4, 8  ;;  %s446_s11 = scalar_lea.sflag [#allocation5], %s445_s4 }
  0xb3   : > { %s3777_s28 = scalar_lea.vmem [#allocation4], %s2742_s8 }
  0xb4   : > { %3444 = dma.done.wait (%p4598_p5), %s446_s11, 4096  }
  0xb5   : > { %3446 = vsyncadd (%p4598_p5), %s446_s11, 4294963200  ;;  %s454_s20 = sand.u32 1, %s3571_s25   ;;  %s3784_s26 = scalar_lea.vmem [#allocation6], %s2742_s8 }
  0xb6   : > { %s455_s12 = scalar_lea.sflag [#allocation7], %s454_s20 }
  0xb7   : > { %3448 = dma.done.wait (%p4598_p5), %s455_s12, 4160  }
  0xb8   : > { %3450 = vsyncadd (%p4598_p5), %s455_s12, 4294963136  ;;  %s2744_s14 = sshll.u32 %s445_s4, 2  ;;  %p4599_p1 = scmp.eq.s32.totalorder %s3571_s25, 0 }
  0xb9   : > { %s3790_s30 = scalar_lea.vmem [#allocation8], %s2744_s14 }
  0xba   : > { %3452 = dma.done.wait (%p4599_p1), [#allocation10], 1040   ;;  %p4600_p8 = pmov %p4599_p1 }
  0xbb   : > { %p4601_p13 = scmp.ne.s32.totalorder %s3571_s25, 0 }
  0xbc   : > { %3454 = vsyncadd (%p4600_p8), [#allocation10], 4294966256  ;;  %v3801_v0 = vld [vmem:[%s4533_s0 + $0x20] sm:$0xff] (!%p4601_p13)  ;;  %v3480_v2 = vmov (!%p4601_p13), 0   ;;  %v531_v3 = vld [vmem:[%s4533_s0 + $0x28] sm:$0xff] (!%p4601_p13)  ;;  %v3481_v9 = vmov (!%p4601_p13), 1  }
  0xbd   : > { %525 = sbr.rel (%p4601_p13) target bundleno = 613 (0x265), region = 92  ;;  %v526_v1 = vld [vmem:[%s4533_s0] sm:$0xff] (!%p4601_p13)  ;;  %3042 = vset.pattern.permute.xlu1 (!%p4601_p13), %v3480_v2  ;;  %3041 = vset.pattern.permute.xlu0 (!%p4601_p13), %v3480_v2  ;;  %v527_v4 = vld [vmem:[%s4533_s0 + $0x8] sm:$0xff] (!%p4601_p13)  ;;  %v529_v5 = vld [vmem:[%s4533_s0 + $0x18] sm:$0xff] (!%p4601_p13)  ;;  %v3482_v10 = vmov (!%p4601_p13), 2   ;;  %v3483_v14 = vmov (!%p4601_p13), 3  }
  0xbe   : > { %558 = vperm.xlu1 (!%p4601_p13), %3042, %v3801_v0   ;;  %538 = vperm.xlu0 (!%p4601_p13), %3041, %v526_v1   ;;  %v3819_v6 = vld [vmem:[%s4533_s0 + $0x10] sm:$0xff] (!%p4601_p13)  ;;  %v533_v7 = vld [vmem:[%s4533_s0 + $0x38] sm:$0xff] (!%p4601_p13)  ;;  %v3049_v11 = vld [vmem:[%s4536_s3] sm:$0xff] (!%p4601_p13)   ;;  %s4602_s9 = sld [smem:[#allocation39_spill]] (!%p4601_p13) }
  0xbf   : > { %v3828_v8 = vld [vmem:[%s4533_s0 + $0x30] sm:$0xff] (!%p4601_p13)  ;;  %2880 = vmatprep.subr.bf16.mxu0 (!%p4601_p13), %v3049_v11  ;;  %2944 = vmatprep.subr.bf16.mxu1 (!%p4601_p13), %v3049_v11  ;;  %v3050_v12 = vld [vmem:[%s4536_s3 + $0x8] sm:$0xff] (!%p4601_p13)   ;;  %v3052_v15 = vld [vmem:[%s4536_s3 + $0x18] sm:$0xff] (!%p4601_p13)  }
  0xc0   : > { %2881 = vmatpush3.bf16.msra.mxu0 (!%p4601_p13), %v3049_v11  ;;  %2952 = vmatpush3.bf16.msra.mxu1 (!%p4601_p13), %v3049_v11  ;;  %v3051_v13 = vld [vmem:[%s4536_s3 + $0x10] sm:$0xff] (!%p4601_p13)   ;;  %v3053_v16 = vld [vmem:[%s4536_s3 + $0x20] sm:$0xff] (!%p4601_p13)   ;;  %v3054_v17 = vld [vmem:[%s4536_s3 + $0x28] sm:$0xff] (!%p4601_p13)  }
  0xc1   : > { %2882 = vmatprep.subr.bf16.mxu0 (!%p4601_p13), %v3050_v12  ;;  %2945 = vmatprep.subr.bf16.mxu1 (!%p4601_p13), %v3050_v12  ;;  %v3055_v18 = vld [vmem:[%s4536_s3 + $0x30] sm:$0xff] (!%p4601_p13)   ;;  %v3056_v19 = vld [vmem:[%s4536_s3 + $0x38] sm:$0xff] (!%p4601_p13)   ;;  %v2748_v42 = vld [vmem:[%s4534_s1] ss:$0 sm:$0xff] (!%p4601_p13) }
  0xc2   : > { %563 = vperm.xlu1 (!%p4601_p13), %3042, %v531_v3   ;;  %543 = vperm.xlu0 (!%p4601_p13), %3041, %v527_v4   ;;  %v2750_v43 = vld [vmem:[%s4534_s1 + $0x1] ss:$0 sm:$0xff] (!%p4601_p13)  ;;  %v3877_v46 = vld [vmem:[%s4534_s1 + $0x2] ss:$0 sm:$0xff] (!%p4601_p13)  ;;  %v2749_v50 = vld [vmem:[%s4535_s2] ss:$0 sm:$0xff] (!%p4601_p13) }
  0xc3   : > { %v3885_v53 = vld [vmem:[%s4534_s1 + $0x3] ss:$0 sm:$0xff] (!%p4601_p13) }
  0xc4   : > { %2883 = vmatpush3.bf16.msra.mxu0 %v3050_v12  ;;  %2953 = vmatpush3.bf16.msra.mxu1 %v3050_v12 }
  0xc5   : > { %2884 = vmatprep.subr.bf16.mxu0 %v3051_v13  ;;  %2946 = vmatprep.subr.bf16.mxu1 %v3051_v13 }
  0xc6   : > { %553 = vperm.xlu1 %3042, %v529_v5   ;;  %548 = vperm.xlu0 %3041, %v3819_v6  }
  0xc8   : > { %2885 = vmatpush3.bf16.msra.mxu0 %v3051_v13  ;;  %2954 = vmatpush3.bf16.msra.mxu1 %v3051_v13 }
  0xc9   : > { %2886 = vmatprep.subr.bf16.mxu0 %v3052_v15  ;;  %2947 = vmatprep.subr.bf16.mxu1 %v3052_v15 }
  0xca   : > { %573 = vperm.xlu1 %3042, %v533_v7   ;;  %568 = vperm.xlu0 %3041, %v3828_v8  }
  0xcc   : > { %2887 = vmatpush3.bf16.msra.mxu0 %v3052_v15  ;;  %2955 = vmatpush3.bf16.msra.mxu1 %v3052_v15 }
  0xcd   : > { %2888 = vmatprep.subr.bf16.mxu0 %v3053_v16  ;;  %2948 = vmatprep.subr.bf16.mxu1 %v3053_v16 }
  0xce   : > { %3044 = vset.pattern.permute.xlu1 %v3481_v9  ;;  %3043 = vset.pattern.permute.xlu0 %v3481_v9 }
  0xcf   : > { %608 = vperm.xlu1 %3044, %v527_v4   ;;  %604 = vperm.xlu0 %3043, %v526_v1  }
  0xd0   : > { %2889 = vmatpush3.bf16.msra.mxu0 %v3053_v16  ;;  %2956 = vmatpush3.bf16.msra.mxu1 %v3053_v16 }
  0xd1   : > { %2890 = vmatprep.subr.bf16.mxu0 %v3054_v17  ;;  %2949 = vmatprep.subr.bf16.mxu1 %v3054_v17 }
  0xd3   : > { %620 = vperm.xlu1 %3044, %v3801_v0   ;;  %624 = vperm.xlu0 %3043, %v531_v3  }
  0xd4   : > { %2891 = vmatpush3.bf16.msra.mxu0 %v3054_v17  ;;  %2957 = vmatpush3.bf16.msra.mxu1 %v3054_v17 }
  0xd5   : > { %2892 = vmatprep.subr.bf16.mxu0 %v3055_v18  ;;  %2950 = vmatprep.subr.bf16.mxu1 %v3055_v18 }
  0xd7   : > { %612 = vperm.xlu1 %3044, %v3819_v6   ;;  %616 = vperm.xlu0 %3043, %v529_v5  }
  0xd8   : > { %2893 = vmatpush3.bf16.msra.mxu0 %v3055_v18  ;;  %2958 = vmatpush3.bf16.msra.mxu1 %v3055_v18 }
  0xd9   : > { %2894 = vmatprep.subr.bf16.mxu0 %v3056_v19  ;;  %2951 = vmatprep.subr.bf16.mxu1 %v3056_v19 }
  0xdb   : > { %628 = vperm.xlu1 %3044, %v3828_v8   ;;  %632 = vperm.xlu0 %3043, %v533_v7  }
  0xdc   : > { %2895 = vmatpush3.bf16.msra.mxu0 %v3056_v19  ;;  %2959 = vmatpush3.bf16.msra.mxu1 %v3056_v19 }
  0xdf   : > { %3045 = vset.pattern.permute.xlu1 %v3482_v10  ;;  %3046 = vset.pattern.permute.xlu0 %v3482_v10 }
  0xe0   : > { %657 = vperm.xlu1 %3045, %v526_v1   ;;  %661 = vperm.xlu0 %3046, %v527_v4  }
  0xe4   : > { %673 = vperm.xlu1 %3045, %v3801_v0   ;;  %665 = vperm.xlu0 %3046, %v3819_v6  }
  0xe8   : > { %677 = vperm.xlu1 %3045, %v531_v3   ;;  %681 = vperm.xlu0 %3046, %v3828_v8  }
  0xec   : > { %669 = vperm.xlu1 %3045, %v529_v5   ;;  %3047 = vset.pattern.permute.xlu0 %v3483_v14 }
  0xed   : > { %710 = vperm.xlu0 %3047, %v526_v1  }
  0xf0   : > { %685 = vperm.xlu1 %3045, %v533_v7  }
  0xf1   : > { %730 = vperm.xlu0 %3047, %v531_v3  }
  0xf4   : > { %3048 = vset.pattern.permute.xlu1 %v3483_v14 }
  0xf5   : > { %714 = vperm.xlu1 %3048, %v527_v4   ;;  %722 = vperm.xlu0 %3047, %v529_v5  }
  0xf9   : > { %726 = vperm.xlu1 %3048, %v3801_v0   ;;  %738 = vperm.xlu0 %3047, %v533_v7  }
  0xfd   : > { %718 = vperm.xlu1 %3048, %v3819_v6  }
 0x101   : > { %734 = vperm.xlu1 %3048, %v3828_v8  }
 0x13d   : > { %v559_v20 = vpop.permute.xlu1 %558  ;;  %v539_v21 = vpop.permute.xlu0 %538 }
 0x13e   : > { %v580_v44 = vmul.f32 %v2748_v42, %v539_v21  ;;  %v584_v51 = vmul.f32 %v2748_v42, %v559_v20 }
 0x140   : > { %v594_v54 = vadd.f32 %v2749_v50, %v580_v44  ;;  %v598_v1 = vadd.f32 %v2749_v50, %v584_v51 }
 0x141   : > { %v564_v22 = vpop.permute.xlu1 %563  ;;  %v544_v23 = vpop.permute.xlu0 %543 }
 0x142   : > { %v581_v48 = vmul.f32 %v2748_v42, %v544_v23  ;;  %v585_v52 = vmul.f32 %v2748_v42, %v564_v22 }
 0x144   : > { %v595_v61 = vadd.f32 %v2749_v50, %v581_v48  ;;  %v599_v2 = vadd.f32 %v2749_v50, %v585_v52 }
 0x145   : > { %v554_v24 = vpop.permute.xlu1 %553  ;;  %v549_v25 = vpop.permute.xlu0 %548 }
 0x146   : > { %v583_v58 = vmul.f32 %v2748_v42, %v554_v24  ;;  %v582_v5 = vmul.f32 %v2748_v42, %v549_v25 }
 0x148   : > { %v597_v9 = vadd.f32 %v2749_v50, %v583_v58  ;;  %v596_v23 = vadd.f32 %v2749_v50, %v582_v5 }
 0x149   : > { %v574_v26 = vpop.permute.xlu1 %573  ;;  %v569_v27 = vpop.permute.xlu0 %568 }
 0x14a   : > { %v587_v15 = vmul.f32 %v2748_v42, %v574_v26  ;;  %v586_v19 = vmul.f32 %v2748_v42, %v569_v27 }
 0x14e   : > { %v609_v28 = vpop.permute.xlu1 %608  ;;  %v605_v29 = vpop.permute.xlu0 %604 }
 0x14f   : > { %v639_v49 = vmul.f32 %v2750_v43, %v605_v29  ;;  %v640_v55 = vmul.f32 %v2750_v43, %v609_v28 }
 0x151   : > { %v647_v62 = vadd.f32 %v639_v49, %v594_v54  ;;  %v648_v6 = vadd.f32 %v640_v55, %v595_v61 }
 0x152   : > { %v621_v30 = vpop.permute.xlu1 %620  ;;  %v625_v31 = vpop.permute.xlu0 %624 }
 0x153   : > { %v644_v59 = vmul.f32 %v2750_v43, %v625_v31  ;;  %v643_v3 = vmul.f32 %v2750_v43, %v621_v30 }
 0x155   : > { %v652_v10 = vadd.f32 %v644_v59, %v599_v2  ;;  %v651_v20 = vadd.f32 %v643_v3, %v598_v1 }
 0x156   : > { %v613_v32 = vpop.permute.xlu1 %612  ;;  %v617_v33 = vpop.permute.xlu0 %616 }
 0x157   : > { %v642_v7 = vmul.f32 %v2750_v43, %v617_v33  ;;  %v641_v21 = vmul.f32 %v2750_v43, %v613_v32  ;;  %v600_v32 = vadd.f32 %v2749_v50, %v586_v19 }
 0x159   : > { %v650_v24 = vadd.f32 %v642_v7, %v597_v9  ;;  %v649_v42 = vadd.f32 %v641_v21, %v596_v23  ;;  %v2753_v7 = vld [vmem:[%s4602_s9] ss:$0 sm:$0xff] }
 0x15a   : > { %v3864_v34 = vpop.permute.xlu1 %628  ;;  %v633_v35 = vpop.permute.xlu0 %632 }
 0x15b   : > { %v646_v29 = vmul.f32 %v2750_v43, %v633_v35  ;;  %v645_v44 = vmul.f32 %v2750_v43, %v3864_v34 }
 0x15d   : > { %v653_v43 = vadd.f32 %v645_v44, %v600_v32 }
 0x15f   : > { %v658_v36 = vpop.permute.xlu1 %657  ;;  %v662_v37 = vpop.permute.xlu0 %661 }
 0x160   : > { %v692_v56 = vmul.f32 %v3877_v46, %v658_v36  ;;  %v693_v63 = vmul.f32 %v3877_v46, %v662_v37 }
 0x162   : > { %v700_v8 = vadd.f32 %v692_v56, %v647_v62  ;;  %v701_v16 = vadd.f32 %v693_v63, %v648_v6 }
 0x163   : > { %v674_v38 = vpop.permute.xlu1 %673  ;;  %v666_v39 = vpop.permute.xlu0 %665 }
 0x164   : > { %v696_v11 = vmul.f32 %v3877_v46, %v674_v38  ;;  %v694_v31 = vmul.f32 %v3877_v46, %v666_v39 }
 0x166   : > { %v704_v30 = vadd.f32 %v696_v11, %v651_v20  ;;  %v702_v51 = vadd.f32 %v694_v31, %v649_v42 }
 0x167   : > { %v678_v40 = vpop.permute.xlu1 %677  ;;  %v3866_v41 = vpop.permute.xlu0 %681 }
 0x168   : > { %v697_v4 = vmul.f32 %v3877_v46, %v678_v40  ;;  %v601_v40 = vadd.f32 %v2749_v50, %v587_v15  ;;  %v698_v52 = vmul.f32 %v3877_v46, %v3866_v41 }
 0x16a   : > { %v705_v22 = vadd.f32 %v697_v4, %v652_v10  ;;  %v654_v39 = vadd.f32 %v646_v29, %v601_v40  ;;  %v706_v61 = vadd.f32 %v698_v52, %v653_v43 }
 0x16b   : > { %v670_v45 = vpop.permute.xlu1 %669 }
 0x16c   : > { %v711_v47 = vpop.permute.xlu0 %710  ;;  %v695_v25 = vmul.f32 %v3877_v46, %v670_v45 }
 0x16d   : > { %v745_v0 = vmul.f32 %v3885_v53, %v711_v47 }
 0x16e   : > { %v703_v45 = vadd.f32 %v695_v25, %v650_v24 }
 0x16f   : > { %v686_v57 = vpop.permute.xlu1 %685  ;;  %v753_v18 = vadd.f32 %v745_v0, %v700_v8 }
 0x170   : > { %v731_v60 = vpop.permute.xlu0 %730  ;;  %v699_v35 = vmul.f32 %v3877_v46, %v686_v57 }
 0x171   : > { %v750_v12 = vmul.f32 %v3885_v53, %v731_v60  ;;  %v761_v38 = vmax.f32 %v753_v18, 0.0 }
 0x172   : > { %v707_v59 = vadd.f32 %v699_v35, %v654_v39 }
 0x173   : > { %v758_v36 = vadd.f32 %v750_v12, %v705_v22 }
 0x174   : > { %v715_v13 = vpop.permute.xlu1 %714  ;;  %v723_v14 = vpop.permute.xlu0 %722 }
 0x175   : > { %v746_v17 = vmul.f32 %v3885_v53, %v715_v13  ;;  %v748_v26 = vmul.f32 %v3885_v53, %v723_v14  ;;  %v766_v55 = vmax.f32 %v758_v36, 0.0 }
 0x177   : > { %v754_v28 = vadd.f32 %v746_v17, %v701_v16  ;;  %v756_v56 = vadd.f32 %v748_v26, %v703_v45 }
 0x178   : > { %v727_v33 = vpop.permute.xlu1 %726  ;;  %v739_v47 = vpop.permute.xlu0 %738 }
 0x179   : > { %v749_v37 = vmul.f32 %v3885_v53, %v727_v33  ;;  %v762_v27 = vmax.f32 %v754_v28, 0.0  ;;  %v752_v58 = vmul.f32 %v3885_v53, %v739_v47  ;;  %v764_v63 = vmax.f32 %v756_v56, 0.0 }
 0x17b   : > { %v785_v48 = vpack.c.bf16 %v762_v27, %v761_v38  ;;  %v757_v49 = vadd.f32 %v749_v37, %v704_v30  ;;  %v760_v0 = vadd.f32 %v752_v58, %v707_v59 }
 0x17c   : > { %v719_v54 = vpop.permute.xlu1 %718 }
 0x17d   : > { %v747_v50 = vmul.f32 %v3885_v53, %v719_v54  ;;  %2896 = vmatprep.mubr.bf16.mxu0 %v785_v48  ;;  %v765_v34 = vmax.f32 %v757_v49, 0.0  ;;  %v768_v3 = vmax.f32 %v760_v0, 0.0 }
 0x17f   : > { %v755_v60 = vadd.f32 %v747_v50, %v702_v51  ;;  %v787_v57 = vpack.c.bf16 %v766_v55, %v765_v34 }
 0x180   : > { %v735_v62 = vpop.permute.xlu1 %734 }
 0x181   : > { %v763_v1 = vmax.f32 %v755_v60, 0.0  ;;  %v751_v41 = vmul.f32 %v3885_v53, %v735_v62  ;;  %2900 = vmatprep.mubr.bf16.mxu1 %v787_v57 }
 0x183   : > { %v759_v46 = vadd.f32 %v751_v41, %v706_v61  ;;  %v786_v2 = vpack.c.bf16 %v764_v63, %v763_v1 }
 0x185   : > { %v767_v4 = vmax.f32 %v759_v46, 0.0  ;;  %2897 = vmatmul.mubr.bf16.vlgmr.msra.gmra.mrb[0].mxu0 %v786_v2 }
 0x187   : > { %v788_v5 = vpack.c.bf16 %v768_v3, %v767_v4 }
 0x189   : > { %2901 = vmatmul.mubr.bf16.vlgmr.msra.gmra.mrb[0].mxu1 %v788_v5 }
 0x258   : > { %v2898_v6 = vpop.f32.mrb[0].mxu0 }
 0x259   : > { %v878_v8 = vpop.f32.mrb[1].mxu0  ;;  %v887_v10 = vadd.f32 %v2898_v6, %v2753_v7 }
 0x25a   : > { %v2899_v9 = vpop.f32.mrb[2].mxu0  ;;  %v879_v13 = vadd.f32 %v2753_v7, %v878_v8 }
 0x25b   : > { %v890_v11 = vadd.f32 %v2899_v9, %v2753_v7  ;;  %v881_v12 = vpop.f32.mrb[3].mxu0 }
 0x25c   : > { %v882_v53 = vadd.f32 %v2753_v7, %v881_v12  ;;  %v2902_v14 = vpop.f32.mrb[0].mxu1 }
 0x25d   : > { %v910_v15 = vpack.c.bf16 %v890_v11, %v887_v10  ;;  %v894_v16 = vpop.f32.mrb[1].mxu1  ;;  %v903_v19 = vadd.f32 %v2902_v14, %v2753_v7 }
 0x25e   : > { %v909_v17 = vpack.c.bf16 %v882_v53, %v879_v13  ;;  %v2903_v18 = vpop.f32.mrb[2].mxu1  ;;  %v895_v22 = vadd.f32 %v2753_v7, %v894_v16 }
 0x25f   : > { %914 = vst [vmem:[#allocation2 + $0x8] sm:$0xff] %v910_v15  ;;  %v906_v20 = vadd.f32 %v2903_v18, %v2753_v7  ;;  %v897_v21 = vpop.f32.mrb[3].mxu1 }
 0x260   : > { %913 = vst [vmem:[#allocation2] sm:$0xff] %v909_v17  ;;  %v898_v23 = vadd.f32 %v2753_v7, %v897_v21 }
 0x261   : > { %v912_v24 = vpack.c.bf16 %v906_v20, %v903_v19 }
 0x262   : > { %v911_v25 = vpack.c.bf16 %v898_v23, %v895_v22 }
 0x263   : > { %916 = vst [vmem:[#allocation2 + $0x18] sm:$0xff] %v912_v24 }
 0x264   : > { %915 = vst [vmem:[#allocation2 + $0x10] sm:$0xff] %v911_v25 }
 0x265 PF: > { %v3057_v28 = vld [vmem:[%s3777_s28 + $0x4] ss:$16 sps:$4 sm:$0xff]   ;;  %v3059_v29 = vld [vmem:[%s3777_s28 + $0xc] ss:$16 sps:$4 sm:$0xff]   ;;  %v4562_v30 = vmov 0   ;;  %p2826_p3 = scmp.ne.s32.totalorder %s3571_s25, 2 }
 0x266   : > { %1199 = vmatprep.mubr.bf16.mxu0 %v4562_v30  ;;  %1272 = vmatprep.mubr.bf16.mxu1 %v4562_v30  ;;  %v3061_v31 = vld [vmem:[%s3777_s28] ss:$16 sps:$4 sm:$0xff]   ;;  %v3062_v33 = vld [vmem:[%s3777_s28 + $0x8] ss:$16 sps:$4 sm:$0xff]   ;;  %v3063_v36 = vld [vmem:[%s3777_s28 + $0x24] ss:$16 sps:$4 sm:$0xff]  }
 0x267   : > { %1167 = vmatprep.subr.bf16.mxu0 %v3057_v28  ;;  %1240 = vmatprep.subr.bf16.mxu1 %v3059_v29  ;;  %v3065_v26 = vld [vmem:[%s3777_s28 + $0x2c] ss:$16 sps:$4 sm:$0xff]   ;;  %v3067_v37 = vld [vmem:[%s3777_s28 + $0x20] ss:$16 sps:$4 sm:$0xff]   ;;  %v3068_v38 = vld [vmem:[%s3777_s28 + $0x28] ss:$16 sps:$4 sm:$0xff]  }
 0x268   : > { %1168 = vmatpush1.bf16.msra.mxu0 %v3061_v31  ;;  %1241 = vmatpush1.bf16.msra.mxu1 %v3062_v33  ;;  %v3069_v27 = vld [vmem:[%s3777_s28 + $0x44] ss:$16 sps:$4 sm:$0xff]   ;;  %v3071_v40 = vld [vmem:[%s3777_s28 + $0x4c] ss:$16 sps:$4 sm:$0xff]   ;;  %v3073_v32 = vld [vmem:[%s3777_s28 + $0x40] ss:$16 sps:$4 sm:$0xff]  }
 0x269   : > { %1169 = vmatprep.subr.bf16.mxu0 %v3063_v36  ;;  %1242 = vmatprep.subr.bf16.mxu1 %v3065_v26  ;;  %v3074_v42 = vld [vmem:[%s3777_s28 + $0x48] ss:$16 sps:$4 sm:$0xff]   ;;  %v3075_v44 = vld [vmem:[%s3777_s28 + $0x64] ss:$16 sps:$4 sm:$0xff]   ;;  %v3077_v47 = vld [vmem:[%s3777_s28 + $0x6c] ss:$16 sps:$4 sm:$0xff]   ;;  %v987_v26 = vlaneseq }
 0x26a   : > { %v3079_v45 = vld [vmem:[%s3777_s28 + $0x60] ss:$16 sps:$4 sm:$0xff]   ;;  %v3080_v35 = vld [vmem:[%s3777_s28 + $0x68] ss:$16 sps:$4 sm:$0xff]   ;;  %v3081_v48 = vld [vmem:[%s3777_s28 + $0x84] ss:$16 sps:$4 sm:$0xff]  }
 0x26b   : > { %v3083_v49 = vld [vmem:[%s3777_s28 + $0x8c] ss:$16 sps:$4 sm:$0xff]   ;;  %v3085_v39 = vld [vmem:[%s3777_s28 + $0x80] ss:$16 sps:$4 sm:$0xff]   ;;  %v3086_v51 = vld [vmem:[%s3777_s28 + $0x88] ss:$16 sps:$4 sm:$0xff]  }
 0x26c   : > { %1170 = vmatpush1.bf16.msra.mxu0 %v3067_v37  ;;  %1243 = vmatpush1.bf16.msra.mxu1 %v3068_v38  ;;  %v3087_v52 = vld [vmem:[%s3777_s28 + $0xa4] ss:$16 sps:$4 sm:$0xff]   ;;  %v3089_v54 = vld [vmem:[%s3777_s28 + $0xac] ss:$16 sps:$4 sm:$0xff]   ;;  %v3091_v55 = vld [vmem:[%s3777_s28 + $0xa0] ss:$16 sps:$4 sm:$0xff]  }
 0x26d   : > { %1171 = vmatprep.subr.bf16.mxu0 %v3069_v27  ;;  %1244 = vmatprep.subr.bf16.mxu1 %v3071_v40  ;;  %v3092_v56 = vld [vmem:[%s3777_s28 + $0xa8] ss:$16 sps:$4 sm:$0xff]   ;;  %v3093_v58 = vld [vmem:[%s3777_s28 + $0xc4] ss:$16 sps:$4 sm:$0xff]   ;;  %v3095_v50 = vld [vmem:[%s3777_s28 + $0xcc] ss:$16 sps:$4 sm:$0xff]  }
 0x26e   : > { %v3097_v34 = vld [vmem:[%s3777_s28 + $0xc0] ss:$16 sps:$4 sm:$0xff]   ;;  %v3098_v43 = vld [vmem:[%s3777_s28 + $0xc8] ss:$16 sps:$4 sm:$0xff]   ;;  %v3099_v59 = vld [vmem:[%s3777_s28 + $0xe4] ss:$16 sps:$4 sm:$0xff]  }
 0x26f   : > { %v3101_v60 = vld [vmem:[%s3777_s28 + $0xec] ss:$16 sps:$4 sm:$0xff]   ;;  %v3103_v57 = vld [vmem:[%s3777_s28 + $0xe0] ss:$16 sps:$4 sm:$0xff]   ;;  %v3104_v61 = vld [vmem:[%s3777_s28 + $0xe8] ss:$16 sps:$4 sm:$0xff]  }
 0x270   : > { %1172 = vmatpush1.bf16.msra.mxu0 %v3073_v32  ;;  %1245 = vmatpush1.bf16.msra.mxu1 %v3074_v42  ;;  %v3943_v62 = vld [vmem:[%s3784_s26 + $0x4] ss:$16 sps:$4 sm:$0xff]   ;;  %v3946_v63 = vld [vmem:[%s3784_s26 + $0xc] ss:$16 sps:$4 sm:$0xff]   ;;  %v3949_v1 = vld [vmem:[%s3784_s26] ss:$16 sps:$4 sm:$0xff]  }
 0x271   : > { %1173 = vmatprep.subr.bf16.mxu0 %v3075_v44  ;;  %1246 = vmatprep.subr.bf16.mxu1 %v3077_v47  ;;  %v982_v0 = vld [vmem:[#allocation2] sm:$0xff]  ;;  %v3952_v41 = vld [vmem:[%s3784_s26 + $0x8] ss:$16 sps:$4 sm:$0xff]   ;;  %v3960_v2 = vld [vmem:[%s3784_s26 + $0x2c] ss:$16 sps:$4 sm:$0xff]   ;;  %v988_v37 = vshrl.u32 %v987_v26, 7 }
 0x272   : > { %v3955_v46 = vld [vmem:[%s3784_s26 + $0x24] ss:$16 sps:$4 sm:$0xff]   ;;  %v3963_v3 = vld [vmem:[%s3784_s26 + $0x20] ss:$16 sps:$4 sm:$0xff]   ;;  %v3968_v4 = vld [vmem:[%s3784_s26 + $0x28] ss:$16 sps:$4 sm:$0xff]  }
 0x273   : > { %v3973_v5 = vld [vmem:[%s3784_s26 + $0x44] ss:$16 sps:$4 sm:$0xff]   ;;  %v3976_v6 = vld [vmem:[%s3784_s26 + $0x4c] ss:$16 sps:$4 sm:$0xff]   ;;  %v3981_v8 = vld [vmem:[%s3784_s26 + $0x40] ss:$16 sps:$4 sm:$0xff]  }
 0x274   : > { %1174 = vmatpush1.bf16.msra.mxu0 %v3079_v45  ;;  %1247 = vmatpush1.bf16.msra.mxu1 %v3080_v35  ;;  %v983_v7 = vld [vmem:[#allocation2 + $0x8] sm:$0xff]  ;;  %v3989_v10 = vld [vmem:[%s3784_s26 + $0x64] ss:$16 sps:$4 sm:$0xff]   ;;  %v3999_v12 = vld [vmem:[%s3784_s26 + $0x60] ss:$16 sps:$4 sm:$0xff]   ;;  %v997_v38 = vsub.s32 2, %v988_v37 }
 0x275   : > { %1175 = vmatprep.subr.bf16.mxu0 %v3081_v48  ;;  %1248 = vmatprep.subr.bf16.mxu1 %v3083_v49  ;;  %v3986_v9 = vld [vmem:[%s3784_s26 + $0x48] ss:$16 sps:$4 sm:$0xff]   ;;  %v3994_v11 = vld [vmem:[%s3784_s26 + $0x6c] ss:$16 sps:$4 sm:$0xff]   ;;  %v4007_v53 = vld [vmem:[%s3784_s26 + $0x84] ss:$16 sps:$4 sm:$0xff]  }
 0x276   : > { %v4002_v13 = vld [vmem:[%s3784_s26 + $0x68] ss:$16 sps:$4 sm:$0xff]   ;;  %v4010_v14 = vld [vmem:[%s3784_s26 + $0x8c] ss:$16 sps:$4 sm:$0xff]   ;;  %v984_v15 = vld [vmem:[#allocation2 + $0x10] sm:$0xff]  ;;  %v1001_v27 = vsub.s32 3, %v988_v37 }
 0x277   : > { %v4017_v16 = vld [vmem:[%s3784_s26 + $0x80] ss:$16 sps:$4 sm:$0xff]   ;;  %v4020_v17 = vld [vmem:[%s3784_s26 + $0x88] ss:$16 sps:$4 sm:$0xff]   ;;  %v4025_v18 = vld [vmem:[%s3784_s26 + $0xa4] ss:$16 sps:$4 sm:$0xff]  }
 0x278   : > { %1176 = vmatpush1.bf16.msra.mxu0 %v3085_v39  ;;  %1249 = vmatpush1.bf16.msra.mxu1 %v3086_v51  ;;  %v4028_v19 = vld [vmem:[%s3784_s26 + $0xac] ss:$16 sps:$4 sm:$0xff]   ;;  %v4033_v20 = vld [vmem:[%s3784_s26 + $0xa0] ss:$16 sps:$4 sm:$0xff]   ;;  %v4036_v21 = vld [vmem:[%s3784_s26 + $0xa8] ss:$16 sps:$4 sm:$0xff]  }
 0x279   : > { %1177 = vmatprep.subr.bf16.mxu0 %v3087_v52  ;;  %1250 = vmatprep.subr.bf16.mxu1 %v3089_v54  ;;  %v4041_v22 = vld [vmem:[%s3784_s26 + $0xc4] ss:$16 sps:$4 sm:$0xff]   ;;  %v4044_v23 = vld [vmem:[%s3784_s26 + $0xcc] ss:$16 sps:$4 sm:$0xff]   ;;  %v4051_v25 = vld [vmem:[%s3784_s26 + $0xc0] ss:$16 sps:$4 sm:$0xff]  }
 0x27a   : > { %v985_v24 = vld [vmem:[#allocation2 + $0x18] sm:$0xff]  ;;  %v4059_v29 = vld [vmem:[%s3784_s26 + $0xe4] ss:$16 sps:$4 sm:$0xff]   ;;  %v4067_v33 = vld [vmem:[%s3784_s26 + $0xe0] ss:$16 sps:$4 sm:$0xff]   ;;  %v989_v40 = vsub.s32 0, %v988_v37 }
 0x27b   : > { %v4054_v28 = vld [vmem:[%s3784_s26 + $0xc8] ss:$16 sps:$4 sm:$0xff]   ;;  %v4062_v31 = vld [vmem:[%s3784_s26 + $0xec] ss:$16 sps:$4 sm:$0xff]   ;;  %v981_v32 = vld [vmem:[%s3790_s30] sm:$0xf] }
 0x27c   : > { %1178 = vmatpush1.bf16.msra.mxu0 %v3091_v55  ;;  %1251 = vmatpush1.bf16.msra.mxu1 %v3092_v56  ;;  %v4070_v36 = vld [vmem:[%s3784_s26 + $0xe8] ss:$16 sps:$4 sm:$0xff]   ;;  %v993_v42 = vsub.s32 1, %v988_v37  ;;  %v4117_v44 = vrot.slane %v981_v32, %v997_v38  ;;  %v4123_v35 = vrot.slane %v981_v32, %v1001_v27  ;;  %v990_v48 = vrot.slane %v981_v32, %v989_v40  ;;  %s4646_s30 = sld [smem:[#allocation42_spill]] (!%p2826_p3)  ;;  %s4647_s20 = sld [smem:[#allocation43_spill]] (!%p2826_p3) }
 0x27d   : > { %1179 = vmatprep.subr.bf16.mxu0 %v3093_v58  ;;  %1252 = vmatprep.subr.bf16.mxu1 %v3095_v50  ;;  %vm3486_vm0 = vmmov (!%p2826_p3), 0   ;;  %s4648_s29 = sld [smem:[#allocation46_spill]] (!%p2826_p3) }
 0x27e   : > { %v994_v51 = vrot.slane %v981_v32, %v993_v42 }
 0x280   : > { %1180 = vmatpush1.bf16.msra.mxu0 %v3097_v34  ;;  %1253 = vmatpush1.bf16.msra.mxu1 %v3098_v43 }
 0x281   : > { %1181 = vmatprep.subr.bf16.mxu0 %v3099_v59  ;;  %1254 = vmatprep.subr.bf16.mxu1 %v3101_v60 }
 0x284   : > { %1182 = vmatpush1.bf16.msra.mxu0 %v3103_v57  ;;  %1255 = vmatpush1.bf16.msra.mxu1 %v3104_v61 }
 0x285   : > { %1509 = vmatprep.subr.bf16.mxu0 %v3943_v62  ;;  %1550 = vmatprep.subr.bf16.mxu1 %v3946_v63 }
 0x287   : > { %1200 = vmatmul.mubr.bf16.vlgmr.msra.gmra.mrb[0].mxu0 %v982_v0  ;;  %1273 = vmatmul.mubr.bf16.vlgmr.msra.gmra.mrb[0].mxu1 %v982_v0 }
 0x288   : > { %1510 = vmatpush1.bf16.msra.mxu0 %v3949_v1  ;;  %1551 = vmatpush1.bf16.msra.mxu1 %v3952_v41 }
 0x289   : > { %1511 = vmatprep.subr.bf16.mxu0 %v3955_v46  ;;  %1552 = vmatprep.subr.bf16.mxu1 %v3960_v2 }
 0x28a   : > { %1209 = vmatprep.mubr.bf16.mxu0 %v4562_v30  ;;  %1282 = vmatprep.mubr.bf16.mxu1 %v4562_v30 }
 0x28c   : > { %1512 = vmatpush1.bf16.msra.mxu0 %v3963_v3  ;;  %1553 = vmatpush1.bf16.msra.mxu1 %v3968_v4 }
 0x28d   : > { %1513 = vmatprep.subr.bf16.mxu0 %v3973_v5  ;;  %1554 = vmatprep.subr.bf16.mxu1 %v3976_v6 }
 0x28f   : > { %1210 = vmatmul.mubr.bf16.gmra.mrb[4].mxu0 %v983_v7  ;;  %1283 = vmatmul.mubr.bf16.gmra.mrb[4].mxu1 %v983_v7 }
 0x290   : > { %1514 = vmatpush1.bf16.msra.mxu0 %v3981_v8  ;;  %1555 = vmatpush1.bf16.msra.mxu1 %v3986_v9 }
 0x291   : > { %1515 = vmatprep.subr.bf16.mxu0 %v3989_v10  ;;  %1556 = vmatprep.subr.bf16.mxu1 %v3994_v11 }
 0x292   : > { %1219 = vmatprep.mubr.bf16.mxu0 %v4562_v30  ;;  %1292 = vmatprep.mubr.bf16.mxu1 %v4562_v30 }
 0x294   : > { %1516 = vmatpush1.bf16.msra.mxu0 %v3999_v12  ;;  %1557 = vmatpush1.bf16.msra.mxu1 %v4002_v13 }
 0x295   : > { %1517 = vmatprep.subr.bf16.mxu0 %v4007_v53  ;;  %1558 = vmatprep.subr.bf16.mxu1 %v4010_v14 }
 0x297   : > { %1220 = vmatmul.mubr.bf16.gmra.mrb[8].mxu0 %v984_v15  ;;  %1293 = vmatmul.mubr.bf16.gmra.mrb[8].mxu1 %v984_v15 }
 0x298   : > { %1518 = vmatpush1.bf16.msra.mxu0 %v4017_v16  ;;  %1559 = vmatpush1.bf16.msra.mxu1 %v4020_v17 }
 0x299   : > { %1519 = vmatprep.subr.bf16.mxu0 %v4025_v18  ;;  %1560 = vmatprep.subr.bf16.mxu1 %v4028_v19 }
 0x29a   : > { %1229 = vmatprep.mubr.bf16.mxu0 %v4562_v30  ;;  %1302 = vmatprep.mubr.bf16.mxu1 %v4562_v30 }
 0x29c   : > { %1520 = vmatpush1.bf16.msra.mxu0 %v4033_v20  ;;  %1561 = vmatpush1.bf16.msra.mxu1 %v4036_v21 }
 0x29d   : > { %1521 = vmatprep.subr.bf16.mxu0 %v4041_v22  ;;  %1562 = vmatprep.subr.bf16.mxu1 %v4044_v23 }
 0x29f   : > { %1230 = vmatmul.mubr.bf16.gmra.mrb[12].mxu0 %v985_v24  ;;  %1303 = vmatmul.mubr.bf16.gmra.mrb[12].mxu1 %v985_v24 }
 0x2a0   : > { %1522 = vmatpush1.bf16.msra.mxu0 %v4051_v25  ;;  %1563 = vmatpush1.bf16.msra.mxu1 %v4054_v28 }
 0x2a1   : > { %1523 = vmatprep.subr.bf16.mxu0 %v4059_v29  ;;  %1564 = vmatprep.subr.bf16.mxu1 %v4062_v31 }
 0x2a2   : > { %1541 = vmatprep.mubr.bf16.mxu0 %v4562_v30  ;;  %1582 = vmatprep.mubr.bf16.mxu1 %v4562_v30 }
 0x2a4   : > { %1524 = vmatpush1.bf16.msra.mxu0 %v4067_v33  ;;  %1565 = vmatpush1.bf16.msra.mxu1 %v4070_v36 }
 0x2a5   : > { %1619 = vmatprep.subr.bf16.mxu0 %v3943_v62  ;;  %1660 = vmatprep.subr.bf16.mxu1 %v3946_v63 }
 0x2a7   : > { %1542 = vmatmul.mubr.bf16.vlgmr.msra.gmra.mrb[16].mxu0 %v4562_v30  ;;  %1583 = vmatmul.mubr.bf16.vlgmr.msra.gmra.mrb[16].mxu1 %v4562_v30 }
 0x2a8   : > { %1620 = vmatpush1.bf16.msra.mxu0 %v3949_v1  ;;  %1661 = vmatpush1.bf16.msra.mxu1 %v3952_v41 }
 0x2a9   : > { %1621 = vmatprep.subr.bf16.mxu0 %v3955_v46  ;;  %1662 = vmatprep.subr.bf16.mxu1 %v3960_v2 }
 0x2aa   : > { %1651 = vmatprep.mubr.bf16.mxu0 %v4562_v30  ;;  %1692 = vmatprep.mubr.bf16.mxu1 %v4562_v30 }
 0x2ac   : > { %1622 = vmatpush1.bf16.msra.mxu0 %v3963_v3  ;;  %1663 = vmatpush1.bf16.msra.mxu1 %v3968_v4 }
 0x2ad   : > { %1623 = vmatprep.subr.bf16.mxu0 %v3973_v5  ;;  %1664 = vmatprep.subr.bf16.mxu1 %v3976_v6 }
 0x2b0   : > { %1624 = vmatpush1.bf16.msra.mxu0 %v3981_v8  ;;  %1665 = vmatpush1.bf16.msra.mxu1 %v3986_v9 }
 0x2b1   : > { %1625 = vmatprep.subr.bf16.mxu0 %v3989_v10  ;;  %1666 = vmatprep.subr.bf16.mxu1 %v3994_v11 }
 0x2b4   : > { %1626 = vmatpush1.bf16.msra.mxu0 %v3999_v12  ;;  %1667 = vmatpush1.bf16.msra.mxu1 %v4002_v13 }
 0x2b5   : > { %1627 = vmatprep.subr.bf16.mxu0 %v4007_v53  ;;  %1668 = vmatprep.subr.bf16.mxu1 %v4010_v14 }
 0x2b8   : > { %1628 = vmatpush1.bf16.msra.mxu0 %v4017_v16  ;;  %1669 = vmatpush1.bf16.msra.mxu1 %v4020_v17 }
 0x2b9   : > { %1629 = vmatprep.subr.bf16.mxu0 %v4025_v18  ;;  %1670 = vmatprep.subr.bf16.mxu1 %v4028_v19 }
 0x2bc   : > { %1630 = vmatpush1.bf16.msra.mxu0 %v4033_v20  ;;  %1671 = vmatpush1.bf16.msra.mxu1 %v4036_v21 }
 0x2bd   : > { %1631 = vmatprep.subr.bf16.mxu0 %v4041_v22  ;;  %1672 = vmatprep.subr.bf16.mxu1 %v4044_v23 }
 0x2c0   : > { %1632 = vmatpush1.bf16.msra.mxu0 %v4051_v25  ;;  %1673 = vmatpush1.bf16.msra.mxu1 %v4054_v28 }
 0x2c1   : > { %1633 = vmatprep.subr.bf16.mxu0 %v4059_v29  ;;  %1674 = vmatprep.subr.bf16.mxu1 %v4062_v31 }
 0x2c4   : > { %1634 = vmatpush1.bf16.msra.mxu0 %v4067_v33  ;;  %1675 = vmatpush1.bf16.msra.mxu1 %v4070_v36 }
 0x2c5   : > { %1732 = vmatprep.subr.bf16.mxu0 %v3943_v62  ;;  %1773 = vmatprep.subr.bf16.mxu1 %v3946_v63 }
 0x35a   : > { %v4119_v47 = vpop.f32.mrb[0].mxu0  ;;  %v4121_v45 = vpop.f32.mrb[0].mxu1 }
 0x35b   : > { %v1203_v49 = vpop.f32.mrb[1].mxu0  ;;  %v1276_v39 = vpop.f32.mrb[1].mxu1 }
 0x35c   : > { %v1205_v52 = vpop.f32.mrb[2].mxu0  ;;  %v1278_v54 = vpop.f32.mrb[2].mxu1 }
 0x35d   : > { %v4125_v55 = vadd.f32 %v1205_v52, %v990_v48  ;;  %v1207_v56 = vpop.f32.mrb[3].mxu0  ;;  %v4128_v58 = vadd.f32 %v1278_v54, %v4117_v44  ;;  %v1280_v50 = vpop.f32.mrb[3].mxu1 }
 0x35e   : > { %v4130_v34 = vadd.f32 %v1207_v56, %v994_v51  ;;  %v4133_v43 = vadd.f32 %v1280_v50, %v4123_v35 }
 0x362   : > { %v1211_v59 = vpop.f32.mrb[4].mxu0  ;;  %v1284_v60 = vpop.f32.mrb[4].mxu1 }
 0x363   : > { %v4135_v57 = vadd.f32 %v1211_v59, %v990_v48  ;;  %v1213_v61 = vpop.f32.mrb[5].mxu0  ;;  %v4138_v0 = vadd.f32 %v1284_v60, %v4117_v44  ;;  %v1286_v7 = vpop.f32.mrb[5].mxu1 }
 0x364   : > { %v4140_v15 = vadd.f32 %v1213_v61, %v994_v51  ;;  %v1215_v24 = vpop.f32.mrb[6].mxu0  ;;  %v4143_v26 = vadd.f32 %v1286_v7, %v4123_v35  ;;  %v1288_v37 = vpop.f32.mrb[6].mxu1 }
 0x365   : > { %v4145_v38 = vadd.f32 %v1215_v24, %v990_v48  ;;  %v1217_v27 = vpop.f32.mrb[7].mxu0  ;;  %v4148_v40 = vadd.f32 %v1288_v37, %v4117_v44  ;;  %v1290_v32 = vpop.f32.mrb[7].mxu1 }
 0x366   : > { %4603 = vst [vmem:[#allocation18_spill] sm:$0xff] %v4143_v26  ;;  %v4150_v42 = vadd.f32 %v1217_v27, %v994_v51  ;;  %v4153_v52 = vadd.f32 %v1290_v32, %v4123_v35 }
 0x367   : > { %4604 = vst [vmem:[#allocation19_spill] sm:$0xff] %v4145_v38  ;;  %4605 = vst [vmem:[#allocation20_spill] sm:$0xff] %v4148_v40 }
 0x368   : > { %4606 = vst [vmem:[#allocation21_spill] sm:$0xff] %v4150_v42  ;;  %4607 = vst [vmem:[#allocation22_spill] sm:$0xff] %v4153_v52 }
 0x36a   : > { %v1221_v54 = vpop.f32.mrb[8].mxu0  ;;  %v1294_v56 = vpop.f32.mrb[8].mxu1 }
 0x36b   : > { %v4155_v50 = vadd.f32 %v1221_v54, %v990_v48  ;;  %v1223_v59 = vpop.f32.mrb[9].mxu0  ;;  %v4158_v60 = vadd.f32 %v1294_v56, %v4117_v44  ;;  %v1296_v61 = vpop.f32.mrb[9].mxu1 }
 0x36c   : > { %v4160_v7 = vadd.f32 %v1223_v59, %v994_v51  ;;  %v1225_v24 = vpop.f32.mrb[10].mxu0  ;;  %v4163_v37 = vadd.f32 %v1296_v61, %v4123_v35  ;;  %v1298_v27 = vpop.f32.mrb[10].mxu1 }
 0x36d   : > { %4608 = vst [vmem:[#allocation23_spill] sm:$0xff] %v4155_v50  ;;  %4609 = vst [vmem:[#allocation24_spill] sm:$0xff] %v4158_v60  ;;  %v4165_v30 = vadd.f32 %v1225_v24, %v990_v48  ;;  %v1227_v32 = vpop.f32.mrb[11].mxu0  ;;  %v4168_v52 = vadd.f32 %v1298_v27, %v4117_v44  ;;  %v1300_v54 = vpop.f32.mrb[11].mxu1 }
 0x36e   : > { %4610 = vst [vmem:[#allocation25_spill] sm:$0xff] %v4160_v7  ;;  %4611 = vst [vmem:[#allocation26_spill] sm:$0xff] %v4163_v37  ;;  %v4170_v50 = vadd.f32 %v1227_v32, %v994_v51  ;;  %v4173_v56 = vadd.f32 %v1300_v54, %v4123_v35 }
 0x36f   : > { %4612 = vst [vmem:[#allocation27_spill] sm:$0xff] %v4165_v30  ;;  %4613 = vst [vmem:[#allocation28_spill] sm:$0xff] %v4168_v52 }
 0x370   : > { %4614 = vst [vmem:[#allocation29_spill] sm:$0xff] %v4170_v50  ;;  %4615 = vst [vmem:[#allocation30_spill] sm:$0xff] %v4173_v56 }
 0x372   : > { %v1231_v60 = vpop.f32.mrb[12].mxu0  ;;  %v1304_v59 = vpop.f32.mrb[12].mxu1 }
 0x373   : > { %v4175_v7 = vadd.f32 %v1231_v60, %v990_v48  ;;  %v1233_v42 = vpop.f32.mrb[13].mxu0  ;;  %v4178_v61 = vadd.f32 %v1304_v59, %v4117_v44  ;;  %v1306_v24 = vpop.f32.mrb[13].mxu1 }
 0x374   : > { %v4180_v30 = vadd.f32 %v1233_v42, %v994_v51  ;;  %v1235_v37 = vpop.f32.mrb[14].mxu0  ;;  %v4183_v27 = vadd.f32 %v1306_v24, %v4123_v35  ;;  %v1308_v32 = vpop.f32.mrb[14].mxu1  ;;  %v1202_v42 = vadd.f32 %v4119_v47, %v990_v48  ;;  %v1204_v24 = vadd.f32 %v1203_v49, %v994_v51 }
 0x375   : > { %4616 = vst [vmem:[#allocation31_spill] sm:$0xff] %v4175_v7  ;;  %4617 = vst [vmem:[#allocation32_spill] sm:$0xff] %v4178_v61  ;;  %v4185_v50 = vadd.f32 %v1235_v37, %v990_v48  ;;  %v1237_v54 = vpop.f32.mrb[15].mxu0  ;;  %v4188_v56 = vadd.f32 %v1308_v32, %v4117_v44  ;;  %v1310_v60 = vpop.f32.mrb[15].mxu1 }
 0x376   : > { %4618 = vst [vmem:[#allocation33_spill] sm:$0xff] %v4180_v30  ;;  %4619 = vst [vmem:[#allocation34_spill] sm:$0xff] %v4183_v27  ;;  %v4190_v7 = vadd.f32 %v1237_v54, %v994_v51  ;;  %v4193_v59 = vadd.f32 %v1310_v60, %v4123_v35  ;;  %v1275_v30 = vadd.f32 %v4121_v45, %v4117_v44 }
 0x377   : > { %4620 = vst [vmem:[#allocation35_spill] sm:$0xff] %v4185_v50  ;;  %4621 = vst [vmem:[#allocation36_spill] sm:$0xff] %v4188_v56  ;;  %v1277_v27 = vadd.f32 %v1276_v39, %v4123_v35 }
 0x378   : > { %4622 = vst [vmem:[#allocation37_spill] sm:$0xff] %v4190_v7  ;;  %4623 = vst [vmem:[#allocation38_spill] sm:$0xff] %v4193_v59 }
 0x37a   : > { %v1543_v37 = vpop.f32.mrb[16].mxu0  ;;  %v1584_v50 = vpop.f32.mrb[16].mxu1 }
 0x37b   : > { %v1591_v61 = vadd.f32 %v1543_v37, %v1202_v42  ;;  %v1593_v52 = vadd.f32 %v1584_v50, %v1275_v30  ;;  %v1545_v32 = vpop.f32.mrb[17].mxu0  ;;  %v1586_v56 = vpop.f32.mrb[17].mxu1 }
 0x37c   : > { %v1592_v40 = vadd.f32 %v1545_v32, %v1204_v24  ;;  %v1594_v54 = vadd.f32 %v1586_v56, %v1277_v27  ;;  %v1547_v7 = vpop.f32.mrb[18].mxu0  ;;  %v1588_v38 = vpop.f32.mrb[18].mxu1 }
 0x37d   : > { %v1595_v60 = vmul.f32 0.5, %v1591_v61  ;;  %v1548_v59 = vpop.f32.mrb[19].mxu0  ;;  %v1589_v26 = vpop.f32.mrb[19].mxu1  ;;  %v1597_v44 = vmul.f32 0.5, %v1593_v52 }
 0x37e   : > { %v1596_v47 = vmul.f32 0.5, %v1592_v40  ;;  %v4624_v59 = vmov 0  }
 0x37f   : > { %3153 = vtanh.f32 %v1595_v60 }
 0x380   : > { %3155 = vtanh.f32 %v1596_v47 }
 0x381   : > { %3157 = vtanh.f32 %v1594_v54 }
 0x382   : > { %3159 = vtanh.f32 %v1597_v44 }
 0x389   : > { %v3154_v45 = vpop.eup %3153 }
 0x38a   : > { %v1601_v35 = vmul.f32 0.5, %v3154_v45  ;;  %v3156_v48 = vpop.eup %3155 }
 0x38b   : > { %v1602_v30 = vmul.f32 0.5, %v3156_v48  ;;  %v3158_v39 = vpop.eup %3157 }
 0x38c   : > { %v1604_v49 = vadd.f32 0.5, %v1601_v35  ;;  %v3160_v26 = vpop.eup %3159 }
 0x38d   : > { %v1605_v51 = vadd.f32 0.5, %v1602_v30  ;;  %v1603_v38 = vmul.f32 0.5, %v3160_v26 }
 0x38e   : > { %v1609_v50 = vmul.f32 %v3158_v39, %v1604_v49 }
 0x38f   : > { %v1608_v56 = vmul.f32 0.0, %v1605_v51  ;;  %v1606_v40 = vadd.f32 0.5, %v1603_v38 }
 0x391   : > { %v4199_v7 = vadd.f32 %v1609_v50, %v1608_v56 }
 0x393   : > { %3161 = vtanh.f32 %v4199_v7 }
 0x39d   : > { %v3162_v61 = vpop.eup %3161 }
 0x39e   : > { %v1612_v27 = vmul.f32 %v3162_v61, %v1606_v40 }
 0x3a0   : > { %v1613_v52 = vpack.c.bf16 %v1612_v27, %v1612_v27 }
 0x3a2   : > { %1614 = vst [vmem:[#allocation2] sm:$0xf] %v1613_v52  ;;  %1652 = vmatmul.mubr.bf16.vlgmr.msra.gmra.mrb[20].mxu0 %v1613_v52  ;;  %1693 = vmatmul.mubr.bf16.vlgmr.msra.gmra.mrb[20].mxu1 %v1613_v52 }
 0x3a3   : > { %1733 = vmatpush1.bf16.msra.mxu0 %v3949_v1  ;;  %1774 = vmatpush1.bf16.msra.mxu1 %v3952_v41 }
 0x3a4   : > { %1734 = vmatprep.subr.bf16.mxu0 %v3955_v46  ;;  %1775 = vmatprep.subr.bf16.mxu1 %v3960_v2 }
 0x3a5   : > { %1764 = vmatprep.mubr.bf16.mxu0 %v4624_v59  ;;  %1805 = vmatprep.mubr.bf16.mxu1 %v4624_v59 }
 0x3a7   : > { %1735 = vmatpush1.bf16.msra.mxu0 %v3963_v3  ;;  %1776 = vmatpush1.bf16.msra.mxu1 %v3968_v4 }
 0x3a8   : > { %1736 = vmatprep.subr.bf16.mxu0 %v3973_v5  ;;  %1777 = vmatprep.subr.bf16.mxu1 %v3976_v6 }
 0x3ab   : > { %1737 = vmatpush1.bf16.msra.mxu0 %v3981_v8  ;;  %1778 = vmatpush1.bf16.msra.mxu1 %v3986_v9 }
 0x3ac   : > { %1738 = vmatprep.subr.bf16.mxu0 %v3989_v10  ;;  %1779 = vmatprep.subr.bf16.mxu1 %v3994_v11 }
 0x3af   : > { %1739 = vmatpush1.bf16.msra.mxu0 %v3999_v12  ;;  %1780 = vmatpush1.bf16.msra.mxu1 %v4002_v13 }
 0x3b0   : > { %1740 = vmatprep.subr.bf16.mxu0 %v4007_v53  ;;  %1781 = vmatprep.subr.bf16.mxu1 %v4010_v14 }
 0x3b3   : > { %1741 = vmatpush1.bf16.msra.mxu0 %v4017_v16  ;;  %1782 = vmatpush1.bf16.msra.mxu1 %v4020_v17 }
 0x3b4   : > { %1742 = vmatprep.subr.bf16.mxu0 %v4025_v18  ;;  %1783 = vmatprep.subr.bf16.mxu1 %v4028_v19 }
 0x3b7   : > { %1743 = vmatpush1.bf16.msra.mxu0 %v4033_v20  ;;  %1784 = vmatpush1.bf16.msra.mxu1 %v4036_v21 }
 0x3b8   : > { %1744 = vmatprep.subr.bf16.mxu0 %v4041_v22  ;;  %1785 = vmatprep.subr.bf16.mxu1 %v4044_v23 }
 0x3bb   : > { %1745 = vmatpush1.bf16.msra.mxu0 %v4051_v25  ;;  %1786 = vmatpush1.bf16.msra.mxu1 %v4054_v28 }
 0x3bc   : > { %1746 = vmatprep.subr.bf16.mxu0 %v4059_v29  ;;  %1787 = vmatprep.subr.bf16.mxu1 %v4062_v31 }
 0x3bf   : > { %1747 = vmatpush1.bf16.msra.mxu0 %v4067_v33  ;;  %1788 = vmatpush1.bf16.msra.mxu1 %v4070_v36 }
 0x3c0   : > { %1842 = vmatprep.subr.bf16.mxu0 %v3943_v62  ;;  %1883 = vmatprep.subr.bf16.mxu1 %v3946_v63 }
 0x475   : > { %v1653_v42 = vpop.f32.mrb[20].mxu0  ;;  %v1694_v24 = vpop.f32.mrb[20].mxu1 }
 0x476   : > { %v1701_v37 = vadd.f32 %v1653_v42, %v4125_v55  ;;  %v1703_v32 = vadd.f32 %v1694_v24, %v4128_v58  ;;  %v1655_v54 = vpop.f32.mrb[21].mxu0  ;;  %v1696_v60 = vpop.f32.mrb[21].mxu1 }
 0x477   : > { %v1702_v47 = vadd.f32 %v1655_v54, %v4130_v34  ;;  %v1704_v44 = vadd.f32 %v1696_v60, %v4133_v43  ;;  %v1657_v45 = vpop.f32.mrb[22].mxu0  ;;  %v1698_v35 = vpop.f32.mrb[22].mxu1 }
 0x478   : > { %v1705_v48 = vmul.f32 0.5, %v1701_v37  ;;  %v1658_v49 = vpop.f32.mrb[23].mxu0  ;;  %v1699_v30 = vpop.f32.mrb[23].mxu1  ;;  %v1707_v51 = vmul.f32 0.5, %v1703_v32 }
 0x479   : > { %v1706_v39 = vmul.f32 0.5, %v1702_v47  ;;  %v4625_v49 = vld [vmem:[#allocation18_spill] sm:$0xff] }
 0x47a   : > { %3163 = vtanh.f32 %v1705_v48 }
 0x47b   : > { %3165 = vtanh.f32 %v1706_v39 }
 0x47c   : > { %3167 = vtanh.f32 %v1704_v44 }
 0x47d   : > { %3169 = vtanh.f32 %v1707_v51 }
 0x484   : > { %v3164_v50 = vpop.eup %3163 }
 0x485   : > { %v1711_v55 = vmul.f32 0.5, %v3164_v50  ;;  %v3166_v56 = vpop.eup %3165 }
 0x486   : > { %v1712_v26 = vmul.f32 0.5, %v3166_v56  ;;  %v3168_v38 = vpop.eup %3167 }
 0x487   : > { %v1714_v58 = vadd.f32 0.5, %v1711_v55  ;;  %v3170_v27 = vpop.eup %3169 }
 0x488   : > { %v1715_v34 = vadd.f32 0.5, %v1712_v26  ;;  %v1713_v52 = vmul.f32 0.5, %v3170_v27 }
 0x489   : > { %v1719_v40 = vmul.f32 %v3168_v38, %v1714_v58 }
 0x48a   : > { %v1718_v43 = vmul.f32 %v1715_v34, %v4199_v7  ;;  %v1716_v42 = vadd.f32 0.5, %v1713_v52 }
 0x48c   : > { %v4241_v61 = vadd.f32 %v1719_v40, %v1718_v43 }
 0x48e   : > { %3171 = vtanh.f32 %v4241_v61 }
 0x498   : > { %v3172_v24 = vpop.eup %3171 }
 0x499   : > { %v1722_v37 = vmul.f32 %v3172_v24, %v1716_v42 }
 0x49b   : > { %v1723_v32 = vpack.c.bf16 %v1722_v37, %v1722_v37 }
 0x49d   : > { %v1725_v54 = vrot.slane %v1723_v32, 4  ;;  %1765 = vmatmul.mubr.bf16.vlgmr.msra.gmra.mrb[24].mxu0 %v1723_v32  ;;  %1806 = vmatmul.mubr.bf16.vlgmr.msra.gmra.mrb[24].mxu1 %v1723_v32 }
 0x49e   : > { %1843 = vmatpush1.bf16.msra.mxu0 %v3949_v1  ;;  %1884 = vmatpush1.bf16.msra.mxu1 %v3952_v41 }
 0x49f   : > { %1727 = vst [vmem:[#allocation2] sm:$0xf0] %v1725_v54  ;;  %1844 = vmatprep.subr.bf16.mxu0 %v3955_v46  ;;  %1885 = vmatprep.subr.bf16.mxu1 %v3960_v2 }
 0x4a0   : > { %1874 = vmatprep.mubr.bf16.mxu0 %v4624_v59  ;;  %1915 = vmatprep.mubr.bf16.mxu1 %v4624_v59 }
 0x4a2   : > { %1845 = vmatpush1.bf16.msra.mxu0 %v3963_v3  ;;  %1886 = vmatpush1.bf16.msra.mxu1 %v3968_v4 }
 0x4a3   : > { %1846 = vmatprep.subr.bf16.mxu0 %v3973_v5  ;;  %1887 = vmatprep.subr.bf16.mxu1 %v3976_v6 }
 0x4a6   : > { %1847 = vmatpush1.bf16.msra.mxu0 %v3981_v8  ;;  %1888 = vmatpush1.bf16.msra.mxu1 %v3986_v9 }
 0x4a7   : > { %1848 = vmatprep.subr.bf16.mxu0 %v3989_v10  ;;  %1889 = vmatprep.subr.bf16.mxu1 %v3994_v11 }
 0x4aa   : > { %1849 = vmatpush1.bf16.msra.mxu0 %v3999_v12  ;;  %1890 = vmatpush1.bf16.msra.mxu1 %v4002_v13 }
 0x4ab   : > { %1850 = vmatprep.subr.bf16.mxu0 %v4007_v53  ;;  %1891 = vmatprep.subr.bf16.mxu1 %v4010_v14 }
 0x4ae   : > { %1851 = vmatpush1.bf16.msra.mxu0 %v4017_v16  ;;  %1892 = vmatpush1.bf16.msra.mxu1 %v4020_v17 }
 0x4af   : > { %1852 = vmatprep.subr.bf16.mxu0 %v4025_v18  ;;  %1893 = vmatprep.subr.bf16.mxu1 %v4028_v19 }
 0x4b2   : > { %1853 = vmatpush1.bf16.msra.mxu0 %v4033_v20  ;;  %1894 = vmatpush1.bf16.msra.mxu1 %v4036_v21 }
 0x4b3   : > { %1854 = vmatprep.subr.bf16.mxu0 %v4041_v22  ;;  %1895 = vmatprep.subr.bf16.mxu1 %v4044_v23 }
 0x4b6   : > { %1855 = vmatpush1.bf16.msra.mxu0 %v4051_v25  ;;  %1896 = vmatpush1.bf16.msra.mxu1 %v4054_v28 }
 0x4b7   : > { %1856 = vmatprep.subr.bf16.mxu0 %v4059_v29  ;;  %1897 = vmatprep.subr.bf16.mxu1 %v4062_v31 }
 0x4ba   : > { %1857 = vmatpush1.bf16.msra.mxu0 %v4067_v33  ;;  %1898 = vmatpush1.bf16.msra.mxu1 %v4070_v36 }
 0x4bb   : > { %1955 = vmatprep.subr.bf16.mxu0 %v3943_v62  ;;  %1996 = vmatprep.subr.bf16.mxu1 %v3946_v63 }
 0x570   : > { %v1766_v7 = vpop.f32.mrb[24].mxu0  ;;  %v1807_v60 = vpop.f32.mrb[24].mxu1 }
 0x571   : > { %v1814_v47 = vadd.f32 %v1766_v7, %v4135_v57  ;;  %v1816_v44 = vadd.f32 %v1807_v60, %v4138_v0  ;;  %v1768_v45 = vpop.f32.mrb[25].mxu0  ;;  %v1809_v35 = vpop.f32.mrb[25].mxu1 }
 0x572   : > { %v1815_v48 = vadd.f32 %v1768_v45, %v4140_v15  ;;  %v1817_v30 = vadd.f32 %v1809_v35, %v4625_v49  ;;  %v1770_v39 = vpop.f32.mrb[26].mxu0  ;;  %v1811_v51 = vpop.f32.mrb[26].mxu1  ;;  %v4627_v35 = vld [vmem:[#allocation20_spill] sm:$0xff] }
 0x573   : > { %v1818_v50 = vmul.f32 0.5, %v1814_v47  ;;  %v1771_v55 = vpop.f32.mrb[27].mxu0  ;;  %v1812_v56 = vpop.f32.mrb[27].mxu1  ;;  %v1820_v26 = vmul.f32 0.5, %v1816_v44  ;;  %v4626_v44 = vld [vmem:[#allocation19_spill] sm:$0xff]  ;;  %v4628_v39 = vld [vmem:[#allocation21_spill] sm:$0xff] }
 0x574   : > { %v1819_v58 = vmul.f32 0.5, %v1815_v48 }
 0x575   : > { %3173 = vtanh.f32 %v1818_v50  ;;  %v4629_v50 = vld [vmem:[#allocation22_spill] sm:$0xff] }
 0x576   : > { %3175 = vtanh.f32 %v1819_v58 }
 0x577   : > { %3177 = vtanh.f32 %v1817_v30 }
 0x578   : > { %3179 = vtanh.f32 %v1820_v26 }
 0x57f   : > { %v3174_v38 = vpop.eup %3173 }
 0x580   : > { %v1824_v57 = vmul.f32 0.5, %v3174_v38  ;;  %v3176_v34 = vpop.eup %3175 }
 0x581   : > { %v1825_v40 = vmul.f32 0.5, %v3176_v34  ;;  %v3178_v43 = vpop.eup %3177 }
 0x582   : > { %v1827_v0 = vadd.f32 0.5, %v1824_v57  ;;  %v3180_v24 = vpop.eup %3179 }
 0x583   : > { %v1828_v15 = vadd.f32 0.5, %v1825_v40  ;;  %v1826_v37 = vmul.f32 0.5, %v3180_v24 }
 0x584   : > { %v1832_v27 = vmul.f32 %v3178_v43, %v1827_v0 }
 0x585   : > { %v1831_v52 = vmul.f32 %v1828_v15, %v4241_v61  ;;  %v1829_v32 = vadd.f32 0.5, %v1826_v37 }
 0x587   : > { %v4283_v42 = vadd.f32 %v1832_v27, %v1831_v52 }
 0x589   : > { %3181 = vtanh.f32 %v4283_v42 }
 0x593   : > { %v3182_v54 = vpop.eup %3181 }
 0x594   : > { %v1835_v7 = vmul.f32 %v3182_v54, %v1829_v32 }
 0x596   : > { %v1836_v60 = vpack.c.bf16 %v1835_v7, %v1835_v7 }
 0x598   : > { %1837 = vst [vmem:[#allocation2 + $0x8] sm:$0xf] %v1836_v60  ;;  %1875 = vmatmul.mubr.bf16.vlgmr.msra.gmra.mrb[28].mxu0 %v1836_v60  ;;  %1916 = vmatmul.mubr.bf16.vlgmr.msra.gmra.mrb[28].mxu1 %v1836_v60 }
 0x599   : > { %1956 = vmatpush1.bf16.msra.mxu0 %v3949_v1  ;;  %1997 = vmatpush1.bf16.msra.mxu1 %v3952_v41 }
 0x59a   : > { %1957 = vmatprep.subr.bf16.mxu0 %v3955_v46  ;;  %1998 = vmatprep.subr.bf16.mxu1 %v3960_v2 }
 0x59b   : > { %1987 = vmatprep.mubr.bf16.mxu0 %v4624_v59  ;;  %2028 = vmatprep.mubr.bf16.mxu1 %v4624_v59 }
 0x59d   : > { %1958 = vmatpush1.bf16.msra.mxu0 %v3963_v3  ;;  %1999 = vmatpush1.bf16.msra.mxu1 %v3968_v4 }
 0x59e   : > { %1959 = vmatprep.subr.bf16.mxu0 %v3973_v5  ;;  %2000 = vmatprep.subr.bf16.mxu1 %v3976_v6 }
 0x5a1   : > { %1960 = vmatpush1.bf16.msra.mxu0 %v3981_v8  ;;  %2001 = vmatpush1.bf16.msra.mxu1 %v3986_v9 }
 0x5a2   : > { %1961 = vmatprep.subr.bf16.mxu0 %v3989_v10  ;;  %2002 = vmatprep.subr.bf16.mxu1 %v3994_v11 }
 0x5a5   : > { %1962 = vmatpush1.bf16.msra.mxu0 %v3999_v12  ;;  %2003 = vmatpush1.bf16.msra.mxu1 %v4002_v13 }
 0x5a6   : > { %1963 = vmatprep.subr.bf16.mxu0 %v4007_v53  ;;  %2004 = vmatprep.subr.bf16.mxu1 %v4010_v14 }
 0x5a9   : > { %1964 = vmatpush1.bf16.msra.mxu0 %v4017_v16  ;;  %2005 = vmatpush1.bf16.msra.mxu1 %v4020_v17 }
 0x5aa   : > { %1965 = vmatprep.subr.bf16.mxu0 %v4025_v18  ;;  %2006 = vmatprep.subr.bf16.mxu1 %v4028_v19 }
 0x5ad   : > { %1966 = vmatpush1.bf16.msra.mxu0 %v4033_v20  ;;  %2007 = vmatpush1.bf16.msra.mxu1 %v4036_v21 }
 0x5ae   : > { %1967 = vmatprep.subr.bf16.mxu0 %v4041_v22  ;;  %2008 = vmatprep.subr.bf16.mxu1 %v4044_v23 }
 0x5b1   : > { %1968 = vmatpush1.bf16.msra.mxu0 %v4051_v25  ;;  %2009 = vmatpush1.bf16.msra.mxu1 %v4054_v28 }
 0x5b2   : > { %1969 = vmatprep.subr.bf16.mxu0 %v4059_v29  ;;  %2010 = vmatprep.subr.bf16.mxu1 %v4062_v31 }
 0x5b5   : > { %1970 = vmatpush1.bf16.msra.mxu0 %v4067_v33  ;;  %2011 = vmatpush1.bf16.msra.mxu1 %v4070_v36 }
 0x5b6   : > { %2065 = vmatprep.subr.bf16.mxu0 %v3943_v62  ;;  %2106 = vmatprep.subr.bf16.mxu1 %v3946_v63 }
 0x66b   : > { %v1876_v61 = vpop.f32.mrb[28].mxu0  ;;  %v1917_v47 = vpop.f32.mrb[28].mxu1 }
 0x66c   : > { %v1924_v45 = vadd.f32 %v1876_v61, %v4626_v44  ;;  %v1926_v48 = vadd.f32 %v1917_v47, %v4627_v35  ;;  %v1878_v49 = vpop.f32.mrb[29].mxu0  ;;  %v1919_v30 = vpop.f32.mrb[29].mxu1 }
 0x66d   : > { %v1925_v51 = vadd.f32 %v1878_v49, %v4628_v39  ;;  %v1927_v55 = vadd.f32 %v1919_v30, %v4629_v50  ;;  %v1880_v56 = vpop.f32.mrb[30].mxu0  ;;  %v1921_v58 = vpop.f32.mrb[30].mxu1 }
 0x66e   : > { %v1928_v26 = vmul.f32 0.5, %v1924_v45  ;;  %v1881_v38 = vpop.f32.mrb[31].mxu0  ;;  %v1922_v57 = vpop.f32.mrb[31].mxu1  ;;  %v1930_v0 = vmul.f32 0.5, %v1926_v48 }
 0x66f   : > { %v1929_v34 = vmul.f32 0.5, %v1925_v51 }
 0x670   : > { %3183 = vtanh.f32 %v1928_v26 }
 0x671   : > { %3185 = vtanh.f32 %v1929_v34 }
 0x672   : > { %3187 = vtanh.f32 %v1927_v55 }
 0x673   : > { %3189 = vtanh.f32 %v1930_v0 }
 0x67a   : > { %v3184_v40 = vpop.eup %3183 }
 0x67b   : > { %v1934_v43 = vmul.f32 0.5, %v3184_v40  ;;  %v3186_v15 = vpop.eup %3185 }
 0x67c   : > { %v1935_v52 = vmul.f32 0.5, %v3186_v15  ;;  %v3188_v24 = vpop.eup %3187 }
 0x67d   : > { %v1937_v27 = vadd.f32 0.5, %v1934_v43  ;;  %v3190_v60 = vpop.eup %3189 }
 0x67e   : > { %v1938_v37 = vadd.f32 0.5, %v1935_v52  ;;  %v1936_v61 = vmul.f32 0.5, %v3190_v60  ;;  %v4383_v60 = vld [vmem:[%s3784_s26 + $0x2c] ss:$16 sps:$4 sm:$0xff]  }
 0x67f   : > { %v1942_v32 = vmul.f32 %v3188_v24, %v1937_v27 }
 0x680   : > { %v1941_v54 = vmul.f32 %v1938_v37, %v4283_v42  ;;  %v1939_v47 = vadd.f32 0.5, %v1936_v61  ;;  %v4389_v61 = vld [vmem:[%s3784_s26 + $0x20] ss:$16 sps:$4 sm:$0xff]  }
 0x682   : > { %v4325_v7 = vadd.f32 %v1942_v32, %v1941_v54  ;;  %v4371_v32 = vld [vmem:[%s3784_s26] ss:$16 sps:$4 sm:$0xff]   ;;  %v4375_v54 = vld [vmem:[%s3784_s26 + $0x8] ss:$16 sps:$4 sm:$0xff]  }
 0x684   : > { %3191 = vtanh.f32 %v4325_v7 }
 0x68e   : > { %v3192_v44 = vpop.eup %3191 }
 0x68f   : > { %v1945_v45 = vmul.f32 %v3192_v44, %v1939_v47  ;;  %v4393_v47 = vld [vmem:[%s3784_s26 + $0x28] ss:$16 sps:$4 sm:$0xff]   ;;  %v4397_v44 = vld [vmem:[%s3784_s26 + $0x44] ss:$16 sps:$4 sm:$0xff]  }
 0x691   : > { %v1946_v35 = vpack.c.bf16 %v1945_v45, %v1945_v45  ;;  %v4401_v45 = vld [vmem:[%s3784_s26 + $0x4c] ss:$16 sps:$4 sm:$0xff]  }
 0x693   : > { %v1948_v48 = vrot.slane %v1946_v35, 4  ;;  %1988 = vmatmul.mubr.bf16.vlgmr.msra.gmra.mrb[32].mxu0 %v1946_v35  ;;  %2029 = vmatmul.mubr.bf16.vlgmr.msra.gmra.mrb[32].mxu1 %v1946_v35  ;;  %v4405_v35 = vld [vmem:[%s3784_s26 + $0x40] ss:$16 sps:$4 sm:$0xff]  }
 0x694   : > { %2066 = vmatpush1.bf16.msra.mxu0 %v3949_v1  ;;  %2107 = vmatpush1.bf16.msra.mxu1 %v3952_v41 }
 0x695   : > { %1950 = vst [vmem:[#allocation2 + $0x8] sm:$0xf0] %v1948_v48  ;;  %2067 = vmatprep.subr.bf16.mxu0 %v3955_v46  ;;  %2108 = vmatprep.subr.bf16.mxu1 %v3960_v2  ;;  %v4630_v46 = vld [vmem:[#allocation23_spill] sm:$0xff] }
 0x696   : > { %2097 = vmatprep.mubr.bf16.mxu0 %v4624_v59  ;;  %2138 = vmatprep.mubr.bf16.mxu1 %v4624_v59  ;;  %v4409_v48 = vld [vmem:[%s3784_s26 + $0x48] ss:$16 sps:$4 sm:$0xff]  }
 0x698   : > { %2068 = vmatpush1.bf16.msra.mxu0 %v3963_v3  ;;  %2109 = vmatpush1.bf16.msra.mxu1 %v3968_v4  ;;  %v4631_v3 = vld [vmem:[#allocation24_spill] sm:$0xff] }
 0x699   : > { %2069 = vmatprep.subr.bf16.mxu0 %v3973_v5  ;;  %2110 = vmatprep.subr.bf16.mxu1 %v3976_v6 }
 0x69c   : > { %2070 = vmatpush1.bf16.msra.mxu0 %v3981_v8  ;;  %2111 = vmatpush1.bf16.msra.mxu1 %v3986_v9  ;;  %v4632_v8 = vld [vmem:[#allocation25_spill] sm:$0xff] }
 0x69d   : > { %2071 = vmatprep.subr.bf16.mxu0 %v3989_v10  ;;  %2112 = vmatprep.subr.bf16.mxu1 %v3994_v11  ;;  %v4633_v10 = vld [vmem:[#allocation26_spill] sm:$0xff] }
 0x6a0   : > { %2072 = vmatpush1.bf16.msra.mxu0 %v3999_v12  ;;  %2113 = vmatpush1.bf16.msra.mxu1 %v4002_v13 }
 0x6a1   : > { %2073 = vmatprep.subr.bf16.mxu0 %v4007_v53  ;;  %2114 = vmatprep.subr.bf16.mxu1 %v4010_v14 }
 0x6a4   : > { %2074 = vmatpush1.bf16.msra.mxu0 %v4017_v16  ;;  %2115 = vmatpush1.bf16.msra.mxu1 %v4020_v17 }
 0x6a5   : > { %2075 = vmatprep.subr.bf16.mxu0 %v4025_v18  ;;  %2116 = vmatprep.subr.bf16.mxu1 %v4028_v19 }
 0x6a8   : > { %2076 = vmatpush1.bf16.msra.mxu0 %v4033_v20  ;;  %2117 = vmatpush1.bf16.msra.mxu1 %v4036_v21 }
 0x6a9   : > { %2077 = vmatprep.subr.bf16.mxu0 %v4041_v22  ;;  %2118 = vmatprep.subr.bf16.mxu1 %v4044_v23 }
 0x6ac   : > { %2078 = vmatpush1.bf16.msra.mxu0 %v4051_v25  ;;  %2119 = vmatpush1.bf16.msra.mxu1 %v4054_v28 }
 0x6ad   : > { %2079 = vmatprep.subr.bf16.mxu0 %v4059_v29  ;;  %2120 = vmatprep.subr.bf16.mxu1 %v4062_v31 }
 0x6b0   : > { %2080 = vmatpush1.bf16.msra.mxu0 %v4067_v33  ;;  %2121 = vmatpush1.bf16.msra.mxu1 %v4070_v36 }
 0x6b1   : > { %2178 = vmatprep.subr.bf16.mxu0 %v3943_v62  ;;  %2219 = vmatprep.subr.bf16.mxu1 %v3946_v63 }
 0x766   : > { %v1989_v1 = vpop.f32.mrb[32].mxu0  ;;  %v2030_v41 = vpop.f32.mrb[32].mxu1 }
 0x767   : > { %v2037_v2 = vadd.f32 %v1989_v1, %v4630_v46  ;;  %v2039_v4 = vadd.f32 %v2030_v41, %v4631_v3  ;;  %v1991_v5 = vpop.f32.mrb[33].mxu0  ;;  %v2032_v6 = vpop.f32.mrb[33].mxu1  ;;  %v4413_v1 = vld [vmem:[%s3784_s26 + $0x64] ss:$16 sps:$4 sm:$0xff]   ;;  %v4417_v41 = vld [vmem:[%s3784_s26 + $0x6c] ss:$16 sps:$4 sm:$0xff]  }
 0x768   : > { %v2038_v9 = vadd.f32 %v1991_v5, %v4632_v8  ;;  %v2040_v11 = vadd.f32 %v2032_v6, %v4633_v10  ;;  %v1993_v42 = vpop.f32.mrb[34].mxu0  ;;  %v2034_v49 = vpop.f32.mrb[34].mxu1 }
 0x769   : > { %v2041_v30 = vmul.f32 0.5, %v2037_v2  ;;  %v1994_v39 = vpop.f32.mrb[35].mxu0  ;;  %v2035_v51 = vpop.f32.mrb[35].mxu1  ;;  %v2043_v63 = vmul.f32 0.5, %v2039_v4 }
 0x76a   : > { %v2042_v62 = vmul.f32 0.5, %v2038_v9 }
 0x76b   : > { %3193 = vtanh.f32 %v2041_v30 }
 0x76c   : > { %3195 = vtanh.f32 %v2042_v62 }
 0x76d   : > { %3197 = vtanh.f32 %v2040_v11 }
 0x76e   : > { %3199 = vtanh.f32 %v2043_v63 }
 0x775   : > { %v3194_v50 = vpop.eup %3193 }
 0x776   : > { %v2047_v55 = vmul.f32 0.5, %v3194_v50  ;;  %v3196_v56 = vpop.eup %3195 }
 0x777   : > { %v2048_v26 = vmul.f32 0.5, %v3196_v56  ;;  %v3198_v38 = vpop.eup %3197 }
 0x778   : > { %v2050_v58 = vadd.f32 0.5, %v2047_v55  ;;  %v3200_v43 = vpop.eup %3199 }
 0x779   : > { %v2051_v57 = vadd.f32 0.5, %v2048_v26  ;;  %v2049_v15 = vmul.f32 0.5, %v3200_v43  ;;  %v3249_v26 = vld [vmem:[%s3784_s26 + $0x84] ss:$16 sps:$4 sm:$0xff]   ;;  %v3255_v43 = vld [vmem:[%s3784_s26 + $0xa0] ss:$16 sps:$4 sm:$0xff]  }
 0x77a   : > { %v2055_v34 = vmul.f32 %v3198_v38, %v2050_v58  ;;  %v3248_v58 = vld [vmem:[%s3784_s26 + $0x68] ss:$16 sps:$4 sm:$0xff]   ;;  %v3250_v38 = vld [vmem:[%s3784_s26 + $0x8c] ss:$16 sps:$4 sm:$0xff]  }
 0x77b   : > { %v2054_v0 = vmul.f32 %v2051_v57, %v4325_v7  ;;  %v2052_v27 = vadd.f32 0.5, %v2049_v15  ;;  %v4379_v7 = vld [vmem:[%s3784_s26 + $0x24] ss:$16 sps:$4 sm:$0xff]   ;;  %v3251_v57 = vld [vmem:[%s3784_s26 + $0x80] ss:$16 sps:$4 sm:$0xff]  }
 0x77c   : > { %v3256_v15 = vld [vmem:[%s3784_s26 + $0xa8] ss:$16 sps:$4 sm:$0xff]  }
 0x77d   : > { %v4367_v40 = vadd.f32 %v2055_v34, %v2054_v0  ;;  %v3252_v34 = vld [vmem:[%s3784_s26 + $0x88] ss:$16 sps:$4 sm:$0xff]   ;;  %v3253_v0 = vld [vmem:[%s3784_s26 + $0xa4] ss:$16 sps:$4 sm:$0xff]  }
 0x77f   : > { %3201 = vtanh.f32 %v4367_v40 }
 0x789   : > { %v3202_v52 = vpop.eup %3201 }
 0x78a   : > { %v2058_v24 = vmul.f32 %v3202_v52, %v2052_v27  ;;  %v3257_v27 = vld [vmem:[%s3784_s26 + $0xc4] ss:$16 sps:$4 sm:$0xff]   ;;  %v3258_v52 = vld [vmem:[%s3784_s26 + $0xcc] ss:$16 sps:$4 sm:$0xff]  }
 0x78c   : > { %v2059_v37 = vpack.c.bf16 %v2058_v24, %v2058_v24  ;;  %v3259_v24 = vld [vmem:[%s3784_s26 + $0xc0] ss:$16 sps:$4 sm:$0xff]  }
 0x78e   : > { %2060 = vst [vmem:[#allocation2 + $0x10] sm:$0xf] %v2059_v37  ;;  %2098 = vmatmul.mubr.bf16.vlgmr.msra.gmra.mrb[36].mxu0 %v2059_v37  ;;  %2139 = vmatmul.mubr.bf16.vlgmr.msra.gmra.mrb[36].mxu1 %v2059_v37  ;;  %v3260_v37 = vld [vmem:[%s3784_s26 + $0xc8] ss:$16 sps:$4 sm:$0xff]  }
 0x78f   : > { %2179 = vmatpush1.bf16.msra.mxu0 %v4371_v32  ;;  %2220 = vmatpush1.bf16.msra.mxu1 %v4375_v54 }
 0x790   : > { %2180 = vmatprep.subr.bf16.mxu0 %v4379_v7  ;;  %2221 = vmatprep.subr.bf16.mxu1 %v4383_v60 }
 0x791   : > { %2210 = vmatprep.mubr.bf16.mxu0 %v4624_v59  ;;  %2251 = vmatprep.mubr.bf16.mxu1 %v4624_v59 }
 0x793   : > { %2181 = vmatpush1.bf16.msra.mxu0 %v4389_v61  ;;  %2222 = vmatpush1.bf16.msra.mxu1 %v4393_v47 }
 0x794   : > { %2182 = vmatprep.subr.bf16.mxu0 %v4397_v44  ;;  %2223 = vmatprep.subr.bf16.mxu1 %v4401_v45 }
 0x797   : > { %2183 = vmatpush1.bf16.msra.mxu0 %v4405_v35  ;;  %2224 = vmatpush1.bf16.msra.mxu1 %v4409_v48 }
 0x798   : > { %2184 = vmatprep.subr.bf16.mxu0 %v4413_v1  ;;  %2225 = vmatprep.subr.bf16.mxu1 %v4417_v41 }
 0x79b   : > { %2185 = vmatpush1.bf16.msra.mxu0 %v3999_v12  ;;  %2226 = vmatpush1.bf16.msra.mxu1 %v4002_v13  ;;  %v3245_v12 = vld [vmem:[%s3784_s26 + $0x4] ss:$16 sps:$4 sm:$0xff]   ;;  %v3246_v13 = vld [vmem:[%s3784_s26 + $0xc] ss:$16 sps:$4 sm:$0xff]  }
 0x79c   : > { %2186 = vmatprep.subr.bf16.mxu0 %v4007_v53  ;;  %2227 = vmatprep.subr.bf16.mxu1 %v4010_v14 }
 0x79f   : > { %2187 = vmatpush1.bf16.msra.mxu0 %v4017_v16  ;;  %2228 = vmatpush1.bf16.msra.mxu1 %v4020_v17  ;;  %v4634_v16 = vld [vmem:[#allocation27_spill] sm:$0xff] }
 0x7a0   : > { %2188 = vmatprep.subr.bf16.mxu0 %v4025_v18  ;;  %2229 = vmatprep.subr.bf16.mxu1 %v4028_v19  ;;  %v4635_v18 = vld [vmem:[#allocation28_spill] sm:$0xff] }
 0x7a3   : > { %2189 = vmatpush1.bf16.msra.mxu0 %v4033_v20  ;;  %2230 = vmatpush1.bf16.msra.mxu1 %v4036_v21 }
 0x7a4   : > { %2190 = vmatprep.subr.bf16.mxu0 %v4041_v22  ;;  %2231 = vmatprep.subr.bf16.mxu1 %v4044_v23  ;;  %v4636_v22 = vld [vmem:[#allocation29_spill] sm:$0xff] }
 0x7a7   : > { %2191 = vmatpush1.bf16.msra.mxu0 %v4051_v25  ;;  %2232 = vmatpush1.bf16.msra.mxu1 %v4054_v28  ;;  %v4637_v25 = vld [vmem:[#allocation30_spill] sm:$0xff] }
 0x7a8   : > { %2192 = vmatprep.subr.bf16.mxu0 %v4059_v29  ;;  %2233 = vmatprep.subr.bf16.mxu1 %v4062_v31 }
 0x7ab   : > { %2193 = vmatpush1.bf16.msra.mxu0 %v4067_v33  ;;  %2234 = vmatpush1.bf16.msra.mxu1 %v4070_v36 }
 0x7ac   : > { %2288 = vmatprep.subr.bf16.mxu0 %v3245_v12  ;;  %2329 = vmatprep.subr.bf16.mxu1 %v3246_v13  ;;  %v4640_v12 = vld [vmem:[#allocation33_spill] sm:$0xff] }
 0x861   : > { %v2099_v53 = vpop.f32.mrb[36].mxu0  ;;  %v2140_v14 = vpop.f32.mrb[36].mxu1 }
 0x862   : > { %v2147_v17 = vadd.f32 %v2099_v53, %v4634_v16  ;;  %v2149_v19 = vadd.f32 %v2140_v14, %v4635_v18  ;;  %v2101_v20 = vpop.f32.mrb[37].mxu0  ;;  %v2142_v21 = vpop.f32.mrb[37].mxu1  ;;  %v4641_v53 = vld [vmem:[#allocation34_spill] sm:$0xff] }
 0x863   : > { %v2148_v23 = vadd.f32 %v2101_v20, %v4636_v22  ;;  %v2150_v28 = vadd.f32 %v2142_v21, %v4637_v25  ;;  %v2103_v29 = vpop.f32.mrb[38].mxu0  ;;  %v2144_v31 = vpop.f32.mrb[38].mxu1 }
 0x864   : > { %v2151_v33 = vmul.f32 0.5, %v2147_v17  ;;  %v2104_v36 = vpop.f32.mrb[39].mxu0  ;;  %v2145_v46 = vpop.f32.mrb[39].mxu1  ;;  %v2153_v3 = vmul.f32 0.5, %v2149_v19 }
 0x865   : > { %v2152_v2 = vmul.f32 0.5, %v2148_v23 }
 0x866   : > { %3203 = vtanh.f32 %v2151_v33 }
 0x867   : > { %3205 = vtanh.f32 %v2152_v2 }
 0x868   : > { %3207 = vtanh.f32 %v2150_v28 }
 0x869   : > { %3209 = vtanh.f32 %v2153_v3 }
 0x870   : > { %v3204_v4 = vpop.eup %3203 }
 0x871   : > { %v2157_v5 = vmul.f32 0.5, %v3204_v4  ;;  %v3206_v6 = vpop.eup %3205 }
 0x872   : > { %v2158_v9 = vmul.f32 0.5, %v3206_v6  ;;  %v3208_v10 = vpop.eup %3207 }
 0x873   : > { %v2160_v8 = vadd.f32 0.5, %v2157_v5  ;;  %v3210_v39 = vpop.eup %3209 }
 0x874   : > { %v2161_v11 = vadd.f32 0.5, %v2158_v9  ;;  %v2159_v51 = vmul.f32 0.5, %v3210_v39 }
 0x875   : > { %v2165_v42 = vmul.f32 %v3208_v10, %v2160_v8 }
 0x876   : > { %v2164_v49 = vmul.f32 %v2161_v11, %v4367_v40  ;;  %v2162_v62 = vadd.f32 0.5, %v2159_v51  ;;  %v3254_v40 = vld [vmem:[%s3784_s26 + $0xac] ss:$16 sps:$4 sm:$0xff]  }
 0x877   : > { %v4643_v51 = vld [vmem:[#allocation36_spill] sm:$0xff] }
 0x878   : > { %v4445_v30 = vadd.f32 %v2165_v42, %v2164_v49  ;;  %v4642_v49 = vld [vmem:[#allocation35_spill] sm:$0xff] }
 0x87a   : > { %3211 = vtanh.f32 %v4445_v30 }
 0x884   : > { %v3212_v63 = vpop.eup %3211 }
 0x885   : > { %v2168_v50 = vmul.f32 %v3212_v63, %v2162_v62 }
 0x887   : > { %v2169_v55 = vpack.c.bf16 %v2168_v50, %v2168_v50 }
 0x889   : > { %v2171_v56 = vrot.slane %v2169_v55, 4  ;;  %2211 = vmatmul.mubr.bf16.vlgmr.msra.gmra.mrb[40].mxu0 %v2169_v55  ;;  %2252 = vmatmul.mubr.bf16.vlgmr.msra.gmra.mrb[40].mxu1 %v2169_v55 }
 0x88a   : > { %2289 = vmatpush1.bf16.msra.mxu0 %v4371_v32  ;;  %2330 = vmatpush1.bf16.msra.mxu1 %v4375_v54  ;;  %v3261_v32 = vld [vmem:[%s3784_s26 + $0xe4] ss:$16 sps:$4 sm:$0xff]   ;;  %v3262_v54 = vld [vmem:[%s3784_s26 + $0xec] ss:$16 sps:$4 sm:$0xff]  }
 0x88b   : > { %2173 = vst [vmem:[#allocation2 + $0x10] sm:$0xf0] %v2171_v56  ;;  %2290 = vmatprep.subr.bf16.mxu0 %v4379_v7  ;;  %2331 = vmatprep.subr.bf16.mxu1 %v4383_v60  ;;  %v3263_v7 = vld [vmem:[%s3784_s26 + $0xe0] ss:$16 sps:$4 sm:$0xff]   ;;  %v3264_v60 = vld [vmem:[%s3784_s26 + $0xe8] ss:$16 sps:$4 sm:$0xff]  }
 0x88c   : > { %2320 = vmatprep.mubr.bf16.mxu0 %v4624_v59  ;;  %2361 = vmatprep.mubr.bf16.mxu1 %v4624_v59  ;;  %v3247_v59 = vld [vmem:[%s3784_s26 + $0x60] ss:$16 sps:$4 sm:$0xff]  }
 0x88d   : > { %v4645_v56 = vld [vmem:[#allocation38_spill] sm:$0xff] }
 0x88e   : > { %2291 = vmatpush1.bf16.msra.mxu0 %v4389_v61  ;;  %2332 = vmatpush1.bf16.msra.mxu1 %v4393_v47 }
 0x88f   : > { %2292 = vmatprep.subr.bf16.mxu0 %v4397_v44  ;;  %2333 = vmatprep.subr.bf16.mxu1 %v4401_v45  ;;  %v4638_v44 = vld [vmem:[#allocation31_spill] sm:$0xff] }
 0x892   : > { %2293 = vmatpush1.bf16.msra.mxu0 %v4405_v35  ;;  %2334 = vmatpush1.bf16.msra.mxu1 %v4409_v48  ;;  %v4639_v35 = vld [vmem:[#allocation32_spill] sm:$0xff] }
 0x893   : > { %2294 = vmatprep.subr.bf16.mxu0 %v4413_v1  ;;  %2335 = vmatprep.subr.bf16.mxu1 %v4417_v41 }
 0x896   : > { %2295 = vmatpush1.bf16.msra.mxu0 %v3247_v59  ;;  %2336 = vmatpush1.bf16.msra.mxu1 %v3248_v58 }
 0x897   : > { %2296 = vmatprep.subr.bf16.mxu0 %v3249_v26  ;;  %2337 = vmatprep.subr.bf16.mxu1 %v3250_v38 }
 0x89a   : > { %2297 = vmatpush1.bf16.msra.mxu0 %v3251_v57  ;;  %2338 = vmatpush1.bf16.msra.mxu1 %v3252_v34 }
 0x89b   : > { %2298 = vmatprep.subr.bf16.mxu0 %v3253_v0  ;;  %2339 = vmatprep.subr.bf16.mxu1 %v3254_v40 }
 0x89e   : > { %2299 = vmatpush1.bf16.msra.mxu0 %v3255_v43  ;;  %2340 = vmatpush1.bf16.msra.mxu1 %v3256_v15 }
 0x89f   : > { %2300 = vmatprep.subr.bf16.mxu0 %v3257_v27  ;;  %2341 = vmatprep.subr.bf16.mxu1 %v3258_v52 }
 0x8a2   : > { %2301 = vmatpush1.bf16.msra.mxu0 %v3259_v24  ;;  %2342 = vmatpush1.bf16.msra.mxu1 %v3260_v37 }
 0x8a3   : > { %2302 = vmatprep.subr.bf16.mxu0 %v3261_v32  ;;  %2343 = vmatprep.subr.bf16.mxu1 %v3262_v54 }
 0x8a6   : > { %2303 = vmatpush1.bf16.msra.mxu0 %v3263_v7  ;;  %2344 = vmatpush1.bf16.msra.mxu1 %v3264_v60 }
 0x95c   : > { %v2212_v61 = vpop.f32.mrb[40].mxu0  ;;  %v2253_v47 = vpop.f32.mrb[40].mxu1 }
 0x95d   : > { %v2260_v45 = vadd.f32 %v2212_v61, %v4638_v44  ;;  %v2262_v48 = vadd.f32 %v2253_v47, %v4639_v35  ;;  %v2214_v1 = vpop.f32.mrb[41].mxu0  ;;  %v2255_v41 = vpop.f32.mrb[41].mxu1 }
 0x95e   : > { %v2261_v13 = vadd.f32 %v2214_v1, %v4640_v12  ;;  %v2263_v14 = vadd.f32 %v2255_v41, %v4641_v53  ;;  %v2216_v16 = vpop.f32.mrb[42].mxu0  ;;  %v2257_v17 = vpop.f32.mrb[42].mxu1  ;;  %v3265_v41 = vld [vmem:[%s4646_s30] sm:$0xff] (!%p2826_p3)   ;;  %v3485_v12 = vmov (!%p2826_p3), 0.0   ;;  %v3267_v53 = vld [vmem:[%s4646_s30 + $0x10] sm:$0xff] (!%p2826_p3)  }
 0x95f   : > { %v2264_v18 = vmul.f32 0.5, %v2260_v45  ;;  %v2217_v19 = vpop.f32.mrb[43].mxu0  ;;  %v2258_v20 = vpop.f32.mrb[43].mxu1  ;;  %v2266_v22 = vmul.f32 0.5, %v2262_v48  ;;  %2904 = vmatprep.subr.bf16.mxu0 (!%p2826_p3), %v3485_v12  ;;  %2924 = vmatprep.subr.bf16.mxu1 (!%p2826_p3), %v3485_v12  ;;  %v3268_v16 = vld [vmem:[%s4646_s30 + $0x18] sm:$0xff] (!%p2826_p3)  }
 0x960   : > { %v2265_v21 = vmul.f32 0.5, %v2261_v13  ;;  %v3266_v13 = vld [vmem:[%s4646_s30 + $0x8] sm:$0xff] (!%p2826_p3)   ;;  %v3274_v17 = vld [vmem:[#allocation9 + $0x8] sm:$0xff] (!%p2826_p3)   ;;  %v3275_v19 = vld [vmem:[#allocation9 + $0x10] sm:$0xff] (!%p2826_p3)  }
 0x961   : > { %3213 = vtanh.f32 %v2264_v18  ;;  %v3269_v18 = vld [vmem:[%s4646_s30 + $0x20] sm:$0xff] (!%p2826_p3)   ;;  %v3270_v20 = vld [vmem:[%s4646_s30 + $0x28] sm:$0xff] (!%p2826_p3)  }
 0x962   : > { %3215 = vtanh.f32 %v2265_v21  ;;  %v3276_v21 = vld [vmem:[#allocation9 + $0x18] sm:$0xff] (!%p2826_p3)  }
 0x963   : > { %3217 = vtanh.f32 %v2263_v14  ;;  %v3273_v14 = vld [vmem:[#allocation9] sm:$0xff] (!%p2826_p3)  }
 0x964   : > { %3219 = vtanh.f32 %v2266_v22  ;;  %v3271_v22 = vld [vmem:[%s4646_s30 + $0x30] sm:$0xff] (!%p2826_p3)  }
 0x96b   : > { %v3214_v23 = vpop.eup %3213 }
 0x96c   : > { %v2270_v25 = vmul.f32 0.5, %v3214_v23  ;;  %v3216_v28 = vpop.eup %3215  ;;  %v3277_v23 = vld [vmem:[#allocation9 + $0x20] sm:$0xff] (!%p2826_p3)  }
 0x96d   : > { %v2271_v31 = vmul.f32 0.5, %v3216_v28  ;;  %v3218_v33 = vpop.eup %3217  ;;  %v3278_v28 = vld [vmem:[#allocation9 + $0x28] sm:$0xff] (!%p2826_p3)  }
 0x96e   : > { %v2273_v29 = vadd.f32 0.5, %v2270_v25  ;;  %v3220_v4 = vpop.eup %3219  ;;  %v3272_v25 = vld [vmem:[%s4646_s30 + $0x38] sm:$0xff] (!%p2826_p3)  }
 0x96f   : > { %v2274_v36 = vadd.f32 0.5, %v2271_v31  ;;  %v2272_v5 = vmul.f32 0.5, %v3220_v4  ;;  %v3280_v31 = vld [vmem:[#allocation9 + $0x38] sm:$0xff] (!%p2826_p3)  }
 0x970   : > { %v2278_v46 = vmul.f32 %v3218_v33, %v2273_v29  ;;  %v3279_v29 = vld [vmem:[#allocation9 + $0x30] sm:$0xff] (!%p2826_p3)  }
 0x971   : > { %v2277_v2 = vmul.f32 %v2274_v36, %v4445_v30  ;;  %v2275_v6 = vadd.f32 0.5, %v2272_v5  ;;  %v4644_v30 = vld [vmem:[#allocation37_spill] sm:$0xff]  ;;  %v2827_v33 = vld [vmem:[%s4647_s20] ss:$0 sm:$0xff] (!%p2826_p3) }
 0x973   : > { %v2279_v3 = vadd.f32 %v2278_v46, %v2277_v2 }
 0x975   : > { %3221 = vtanh.f32 %v2279_v3 }
 0x97f   : > { %v3222_v8 = vpop.eup %3221 }
 0x980   : > { %v2281_v9 = vmul.f32 %v3222_v8, %v2275_v6  ;;  %v2836_v8 = vld [vmem:[#allocation11] ss:$0 sm:$0xff] (!%p2826_p3) }
 0x982   : > { %v2282_v10 = vpack.c.bf16 %v2281_v9, %v2281_v9 }
 0x984   : > { %2283 = vst [vmem:[#allocation2 + $0x18] sm:$0xf] %v2282_v10  ;;  %2321 = vmatmul.mubr.bf16.vlgmr.msra.gmra.mrb[44].mxu0 %v2282_v10  ;;  %2362 = vmatmul.mubr.bf16.vlgmr.msra.gmra.mrb[44].mxu1 %v2282_v10 }
 0x985   : > { %2905 = vmatpush3.bf16.msra.mxu0 (!%p2826_p3), %v3265_v41  ;;  %2920 = vmatprep.mubr.msk.bf16.mxu0 (!%p2826_p3), %vm3486_vm0, %v3485_v12 }
 0x986   : > { %2906 = vmatprep.subr.bf16.mxu0 (!%p2826_p3), %v3485_v12  ;;  %2940 = vmatprep.mubr.msk.bf16.mxu1 (!%p2826_p3), %vm3486_vm0, %v3485_v12 }
 0x987   : > { %2925 = vmatpush3.bf16.msra.mxu1 (!%p2826_p3), %v3273_v14 }
 0x988   : > { %2926 = vmatprep.subr.bf16.mxu1 (!%p2826_p3), %v3485_v12 }
 0x989   : > { %2907 = vmatpush3.bf16.msra.mxu0 (!%p2826_p3), %v3266_v13 }
 0x98a   : > { %2908 = vmatprep.subr.bf16.mxu0 (!%p2826_p3), %v3485_v12 }
 0x98b   : > { %2927 = vmatpush3.bf16.msra.mxu1 (!%p2826_p3), %v3274_v17 }
 0x98c   : > { %2928 = vmatprep.subr.bf16.mxu1 (!%p2826_p3), %v3485_v12 }
 0x98d   : > { %2909 = vmatpush3.bf16.msra.mxu0 (!%p2826_p3), %v3267_v53 }
 0x98e   : > { %2910 = vmatprep.subr.bf16.mxu0 (!%p2826_p3), %v3485_v12 }
 0x98f   : > { %2929 = vmatpush3.bf16.msra.mxu1 (!%p2826_p3), %v3275_v19 }
 0x990   : > { %2930 = vmatprep.subr.bf16.mxu1 (!%p2826_p3), %v3485_v12 }
 0x991   : > { %2911 = vmatpush3.bf16.msra.mxu0 (!%p2826_p3), %v3268_v16 }
 0x992   : > { %2912 = vmatprep.subr.bf16.mxu0 (!%p2826_p3), %v3485_v12 }
 0x993   : > { %2931 = vmatpush3.bf16.msra.mxu1 (!%p2826_p3), %v3276_v21 }
 0x994   : > { %2932 = vmatprep.subr.bf16.mxu1 (!%p2826_p3), %v3485_v12 }
 0x995   : > { %2913 = vmatpush3.bf16.msra.mxu0 (!%p2826_p3), %v3269_v18 }
 0x996   : > { %2914 = vmatprep.subr.bf16.mxu0 (!%p2826_p3), %v3485_v12 }
 0x997   : > { %2933 = vmatpush3.bf16.msra.mxu1 (!%p2826_p3), %v3277_v23 }
 0x998   : > { %2934 = vmatprep.subr.bf16.mxu1 (!%p2826_p3), %v3485_v12 }
 0x999   : > { %2915 = vmatpush3.bf16.msra.mxu0 (!%p2826_p3), %v3270_v20 }
 0x99a   : > { %2916 = vmatprep.subr.bf16.mxu0 (!%p2826_p3), %v3485_v12 }
 0x99b   : > { %2935 = vmatpush3.bf16.msra.mxu1 (!%p2826_p3), %v3278_v28 }
 0x99c   : > { %2936 = vmatprep.subr.bf16.mxu1 (!%p2826_p3), %v3485_v12 }
 0x99d   : > { %2917 = vmatpush3.bf16.msra.mxu0 (!%p2826_p3), %v3271_v22 }
 0x99e   : > { %2918 = vmatprep.subr.bf16.mxu0 (!%p2826_p3), %v3485_v12 }
 0x99f   : > { %2937 = vmatpush3.bf16.msra.mxu1 (!%p2826_p3), %v3279_v29 }
 0x9a0   : > { %2938 = vmatprep.subr.bf16.mxu1 (!%p2826_p3), %v3485_v12 }
 0x9a1   : > { %2919 = vmatpush3.bf16.msra.mxu0 (!%p2826_p3), %v3272_v25 }
 0x9a3   : > { %2939 = vmatpush3.bf16.msra.mxu1 (!%p2826_p3), %v3280_v31 }
 0xa57   : > { %v2322_v11 = vpop.f32.mrb[44].mxu0  ;;  %v2363_v42 = vpop.f32.mrb[44].mxu1 }
 0xa58   : > { %v2370_v39 = vadd.f32 %v2322_v11, %v4642_v49  ;;  %v2372_v62 = vadd.f32 %v2363_v42, %v4643_v51  ;;  %v2324_v63 = vpop.f32.mrb[45].mxu0  ;;  %v2365_v50 = vpop.f32.mrb[45].mxu1 }
 0xa59   : > { %v2371_v55 = vadd.f32 %v2324_v63, %v4644_v30  ;;  %v2373_v59 = vadd.f32 %v2365_v50, %v4645_v56  ;;  %v2326_v58 = vpop.f32.mrb[46].mxu0  ;;  %v2367_v26 = vpop.f32.mrb[46].mxu1 }
 0xa5a   : > { %v2374_v38 = vmul.f32 0.5, %v2370_v39  ;;  %v2327_v57 = vpop.f32.mrb[47].mxu0  ;;  %v2368_v34 = vpop.f32.mrb[47].mxu1  ;;  %v2376_v40 = vmul.f32 0.5, %v2372_v62 }
 0xa5b   : > { %v2375_v0 = vmul.f32 0.5, %v2371_v55 }
 0xa5c   : > { %3223 = vtanh.f32 %v2374_v38 }
 0xa5d   : > { %3225 = vtanh.f32 %v2375_v0 }
 0xa5e   : > { %3227 = vtanh.f32 %v2373_v59 }
 0xa5f   : > { %3229 = vtanh.f32 %v2376_v40 }
 0xa66   : > { %v3224_v43 = vpop.eup %3223 }
 0xa67   : > { %v2380_v15 = vmul.f32 0.5, %v3224_v43  ;;  %v3226_v27 = vpop.eup %3225 }
 0xa68   : > { %v2381_v24 = vmul.f32 0.5, %v3226_v27  ;;  %v3228_v37 = vpop.eup %3227 }
 0xa69   : > { %v2383_v52 = vadd.f32 0.5, %v2380_v15  ;;  %v3230_v61 = vpop.eup %3229 }
 0xa6a   : > { %v2384_v32 = vadd.f32 0.5, %v2381_v24  ;;  %v2382_v47 = vmul.f32 0.5, %v3230_v61 }
 0xa6b   : > { %v2388_v54 = vmul.f32 %v3228_v37, %v2383_v52 }
 0xa6c   : > { %v2387_v7 = vmul.f32 %v2384_v32, %v2279_v3  ;;  %v2385_v44 = vadd.f32 0.5, %v2382_v47 }
 0xa6e   : > { %v2389_v60 = vadd.f32 %v2388_v54, %v2387_v7 }
 0xa70   : > { %3231 = vtanh.f32 %v2389_v60 }
 0xa7a   : > { %v3232_v45 = vpop.eup %3231 }
 0xa7b   : > { %v2391_v35 = vmul.f32 %v3232_v45, %v2385_v44  ;;  %2400 = sbr.rel (%p2826_p3) target bundleno = 3120 (0xc30), region = 96 }
 0xa7d   : > { %v2392_v48 = vpack.c.bf16 %v2391_v35, %v2391_v35 }
 0xa7f   : > { %v2394_v1 = vrot.slane %v2392_v48, 4  ;;  %2921 = vmatmul.mubr.bf16.vlgmr.msra.gmra.mrb[0].mxu0 (!%p2826_p3), %v2392_v48 }
 0xa81   : > { %2396 = vst [vmem:[#allocation2 + $0x18] sm:$0xf0] %v2394_v1 }
 0xb52   : > { %v2506_v36 = vpop.f32.mrb[0].mxu0 }
 0xb53   : > { %v2507_v46 = vadd.f32 %v2827_v33, %v2506_v36  ;;  %v2922_v2 = vpop.f32.mrb[1].mxu0 }
 0xb54   : > { %v2509_v3 = vpop.f32.mrb[2].mxu0 }
 0xb55   : > { %v2512_v4 = vmax.f32 %v2507_v46, 0.0  ;;  %v2923_v5 = vpop.f32.mrb[3].mxu0 }
 0xb57   : > { %v2529_v6 = vpack.c.bf16 %v2512_v4, %v2512_v4 }
 0xb59   : > { %2941 = vmatmul.mubr.bf16.vlgmr.msra.gmra.mrb[0].mxu1 %v2529_v6 }
 0xc2c   : > { %v2619_v9 = vpop.f32.mrb[0].mxu1 }
 0xc2d   : > { %v2620_v10 = vadd.f32 %v2836_v8, %v2619_v9  ;;  %v2942_v11 = vpop.f32.mrb[1].mxu1 }
 0xc2e   : > { %v2622_v42 = vpop.f32.mrb[2].mxu1 }
 0xc2f   : > { %2625 = vst [vmem:[%s4648_s29] sm:$0xff] %v2620_v10  ;;  %v2943_v49 = vpop.f32.mrb[3].mxu1 }
 0xc30 PF: > { %s4649_s24 = sld [smem:[#allocation16_spill]]  ;;  %s4650_s6 = sld [smem:[#allocation15_spill]] }
 0xc31   : > { %s4651_s23 = sld [smem:[#allocation17_spill]]  ;;  %s4652_s21 = smov %s3461_s22 }
 0xc36   : > { %p26_p10 = scmp.ge.s32.totalorder %s4649_s24, 5   ;;  %s4653_s22 = smov %s4650_s6 }
 0xc38   :  { %28 = sbr.rel (!%p26_p10) target bundleno = 15 (0xf), region = 144 }
 0xc3f   :  { %2637 = vsyncpa [#allocation5], 1 }
 0xc40   :  { %2639 = vsyncpa [#allocation5 + $0x1], 1 }
 0xc41   :  { %2640 = vsyncpa [#allocation7], 1 }
 0xc42   :  { %2642 = vsyncpa [#allocation7 + $0x1], 1 }
 0xc43   :  { %2643 = vsyncpa [#allocation10], 1 }

</bundles_post_ra>
